<compile_context>
chip_gen: v7x
topology: tpu7x:2x2x1
jax: 0.10.0
libtpu: 0.0.40
codegen_flags: <defaults>
</compile_context>

<pallas_src>
import functools
import math

import numpy as np
import jax
import jax.numpy as jnp
from jax.experimental import pallas as pl
from jax.experimental.pallas import tpu as pltpu

# ----------------------- model config (small, synthetic) -----------------------
VOCAB = 50
TYPE_VOCAB = 2
MAX_POS = 16
HIDDEN = 32
NUM_HEADS = 4
HEAD_DIM = HIDDEN // NUM_HEADS
INTERMEDIATE = 64
NUM_LAYERS = 2
NUM_ANSWERS = 10
CLS_HID = 64
LN_EPS = 1e-12
LANES = 128          # lane width of the packed parameter blobs


def _r8(n):
    return ((n + 7) // 8) * 8


# ---------------- static layout of the two packed parameter blobs ---------------
def _build_w_layout():
    entries = [
        ("word_emb", VOCAB, HIDDEN),
        ("pos_emb", MAX_POS, HIDDEN),
        ("type_emb", TYPE_VOCAB, HIDDEN),
    ]
    for l in range(NUM_LAYERS):
        entries += [
            (f"wqkv{l}", HIDDEN, 3 * HIDDEN),
            (f"wo{l}", HIDDEN, HIDDEN),
            (f"w1{l}", HIDDEN, INTERMEDIATE),
            (f"w2{l}", INTERMEDIATE, HIDDEN),
        ]
    entries += [
        ("pool_w", HIDDEN, HIDDEN),
        ("cls_w1", HIDDEN, CLS_HID),
        ("cls_w2", CLS_HID, NUM_ANSWERS),
    ]
    layout, off = {}, 0
    for name, r, c in entries:
        layout[name] = (off, r, c)
        off += _r8(r)                      # 8-aligned row offsets
    return layout, _r8(off)


W_LAYOUT, W_ROWS = _build_w_layout()


def _build_v_layout():
    entries = [("emb_ln_g", HIDDEN), ("emb_ln_b", HIDDEN)]
    for l in range(NUM_LAYERS):
        entries += [
            (f"bqkv{l}", 3 * HIDDEN), (f"bo{l}", HIDDEN),
            (f"ln1_g{l}", HIDDEN), (f"ln1_b{l}", HIDDEN),
            (f"b1{l}", INTERMEDIATE), (f"b2{l}", HIDDEN),
            (f"ln2_g{l}", HIDDEN), (f"ln2_b{l}", HIDDEN),
        ]
    entries += [("pool_b", HIDDEN), ("cls_b1", CLS_HID), ("cls_b2", NUM_ANSWERS)]
    layout = {name: (i, c) for i, (name, c) in enumerate(entries)}
    return layout, _r8(len(entries))


V_LAYOUT, V_ROWS = _build_v_layout()


# ------------------------------ fused Pallas kernel -----------------------------
def _layer_norm(x, g, b):
    mu = jnp.mean(x, axis=-1, keepdims=True)
    xc = x - mu
    var = jnp.mean(xc * xc, axis=-1, keepdims=True)
    return xc * jax.lax.rsqrt(var + LN_EPS) * g + b


def _fused_forward_kernel(tok_ref, key_ref, wblob_ref, vblob_ref,
                          logits_ref, attn_ref, *, batch, seq):
    f32 = jnp.float32
    bs = batch * seq
    scale = 1.0 / math.sqrt(HEAD_DIM)

    def W(name):                                   # (rows, cols) weight slice
        off, r, c = W_LAYOUT[name]
        return wblob_ref[off:off + r, 0:c]

    def V(name):                                   # (1, cols) bias/scale slice
        row, c = V_LAYOUT[name]
        return vblob_ref[row:row + 1, 0:c]

    # ---- embeddings: one-hot word gather on MXU + VPU type select + pos add ----
    ids = tok_ref[:, 0:1]                          # (bs, 1) int32
    typ = tok_ref[:, 1:2]                          # (bs, 1) int32
    row_bid = tok_ref[:, 2:3]                      # (bs, 1) int32 batch id

    w_off, _, _ = W_LAYOUT["word_emb"]
    vocab_pad = _r8(VOCAB)                         # padded rows are zero
    word_oh = jnp.where(
        ids == jax.lax.broadcasted_iota(jnp.int32, (bs, vocab_pad), 1), 1.0, 0.0)
    word_e = jnp.dot(word_oh, wblob_ref[w_off:w_off + vocab_pad, 0:HIDDEN],
                     preferred_element_type=f32)

    t_off, _, _ = W_LAYOUT["type_emb"]
    if TYPE_VOCAB == 2:
        # VPU select between the two type rows (no degenerate K=2 matmul).
        type_e = jnp.where(typ == 0,
                           wblob_ref[t_off:t_off + 1, 0:HIDDEN],
                           wblob_ref[t_off + 1:t_off + 2, 0:HIDDEN])
    else:  # generic fallback: one-hot gather
        tpad = _r8(TYPE_VOCAB)
        type_oh = jnp.where(
            typ == jax.lax.broadcasted_iota(jnp.int32, (bs, tpad), 1), 1.0, 0.0)
        type_e = jnp.dot(type_oh, wblob_ref[t_off:t_off + tpad, 0:HIDDEN],
                         preferred_element_type=f32)

    p_off, _, _ = W_LAYOUT["pos_emb"]
    pos_s = wblob_ref[p_off:p_off + seq, 0:HIDDEN]           # (seq, H)
    pos_e = jnp.concatenate([pos_s] * batch, axis=0) if batch > 1 else pos_s

    x = _layer_norm(word_e + type_e + pos_e, V("emb_ln_g"), V("emb_ln_b"))

    # ---- additive attention mask over flattened (bs, bs) block-diag scores ----
    maskf = key_ref[0:1, :].astype(f32)                      # (1, bs), 1 = keep
    col_bid = key_ref[1:2, :]                                # (1, bs) batch id
    block = jnp.where(row_bid == col_bid, 0.0, -10000.0)     # cross-batch mask
    attn_mask = block + (1.0 - maskf) * -10000.0             # (bs, bs)

    for l in range(NUM_LAYERS):
        # fused QKV projection: one MXU pass, lane-dense (bs, 3H) output
        qkv = (jnp.dot(x, W(f"wqkv{l}"), preferred_element_type=f32)
               + V(f"bqkv{l}"))

        ctxs, probs = [], []
        for h in range(NUM_HEADS):
            c0 = h * HEAD_DIM
            qh = qkv[:, c0:c0 + HEAD_DIM]
            kh = qkv[:, HIDDEN + c0:HIDDEN + c0 + HEAD_DIM]
            vh = qkv[:, 2 * HIDDEN + c0:2 * HIDDEN + c0 + HEAD_DIM]
            # one (bs, bs) score matrix per head; cross-batch entries masked to
            # -1e4 so exp underflows to exactly 0 -> identical per-batch softmax.
            scores = jax.lax.dot_general(
                qh, kh, (((1,), (1,)), ((), ())),
                preferred_element_type=f32) * scale + attn_mask
            m = jnp.max(scores, axis=-1, keepdims=True)
            e = jnp.exp(scores - m)
            p = e * pl.reciprocal(jnp.sum(e, axis=-1, keepdims=True), approx=False)
            probs.append(p)
            ctxs.append(jnp.dot(p, vh, preferred_element_type=f32))   # (bs, hd)

        # lane-dense attention-prob writeback: one (seq, NUM_HEADS*seq) block per
        # (layer, batch); wrapper reshapes back to (L, B, H, S, S).
        for b in range(batch):
            r0 = b * seq
            blk = jnp.concatenate(
                [probs[h][r0:r0 + seq, r0:r0 + seq] for h in range(NUM_HEADS)],
                axis=1)
            row0 = (l * batch + b) * seq
            attn_ref[row0:row0 + seq, :] = blk

        # heads concatenated along lanes in registers -> no VMEM scratch
        ctx = jnp.concatenate(ctxs, axis=1)                  # (bs, HIDDEN)
        attn_out = (jnp.dot(ctx, W(f"wo{l}"), preferred_element_type=f32)
                    + V(f"bo{l}"))
        x = _layer_norm(x + attn_out, V(f"ln1_g{l}"), V(f"ln1_b{l}"))

        inter = jnp.dot(x, W(f"w1{l}"), preferred_element_type=f32) + V(f"b1{l}")
        # TODO(synk): HF/PyTorch BERT uses exact erf GELU; tanh approximation
        # kept for a guaranteed Mosaic lowering (small numeric drift).
        inter = jax.nn.gelu(inter, approximate=True)
        ffn = jnp.dot(inter, W(f"w2{l}"), preferred_element_type=f32) + V(f"b2{l}")
        x = _layer_norm(x + ffn, V(f"ln2_g{l}"), V(f"ln2_b{l}"))

    # ---- pooler: tanh(Linear(hidden[:, 0])) -> cls_hidden_state ----
    cls_rows = [x[b * seq:b * seq + 1, :] for b in range(batch)]
    cls_tok = cls_rows[0] if batch == 1 else jnp.concatenate(cls_rows, axis=0)
    pooled = jnp.tanh(
        jnp.dot(cls_tok, W("pool_w"), preferred_element_type=f32) + V("pool_b"))

    # ---- classifier (weight_norm already folded into the packed weights) ----
    hcls = jnp.maximum(
        jnp.dot(pooled, W("cls_w1"), preferred_element_type=f32) + V("cls_b1"),
        0.0)
    logits_ref[...] = (jnp.dot(hcls, W("cls_w2"), preferred_element_type=f32)
                       + V("cls_b2"))


def _full_spec(shape):
    nd = len(shape)
    return pl.BlockSpec(shape, lambda i, _nd=nd: (0,) * _nd)


def bert_vqa_forward(params, input_ids, input_mask, input_token_type):
    B, S = input_ids.shape
    assert S <= MAX_POS
    bs = B * S

    batch_id = np.repeat(np.arange(B, dtype=np.int32), S)        # static constant
    tok = jnp.concatenate(
        [input_ids.reshape(bs, 1).astype(jnp.int32),
         input_token_type.reshape(bs, 1).astype(jnp.int32),
         jnp.asarray(batch_id.reshape(bs, 1))], axis=1)           # (bs, 3)
    keyinfo = jnp.concatenate(
        [input_mask.reshape(1, bs).astype(jnp.int32),
         jnp.asarray(batch_id.reshape(1, bs))], axis=0)           # (2, bs)

    inputs = (tok, keyinfo, params["wblob"], params["vblob"])
    kern = functools.partial(_fused_forward_kernel, batch=B, seq=S)
    logits, attn_flat = pl.pallas_call(
        kern,
        out_shape=(
            jax.ShapeDtypeStruct((B, NUM_ANSWERS), jnp.float32),
            jax.ShapeDtypeStruct((NUM_LAYERS * B * S, NUM_HEADS * S), jnp.float32),
        ),
        grid=(1,),
        in_specs=[_full_spec(a.shape) for a in inputs],
        out_specs=(
            _full_spec((B, NUM_ANSWERS)),
            _full_spec((NUM_LAYERS * B * S, NUM_HEADS * S)),
        ),
        compiler_params=pltpu.CompilerParams(
            dimension_semantics=("arbitrary",)),
    )(*inputs)

    attention = attn_flat.reshape(NUM_LAYERS, B, S, NUM_HEADS, S).transpose(
        0, 1, 3, 2, 4)
    return logits, attention


bert_vqa_forward_jit = jax.jit(bert_vqa_forward)


# --------------------------- parameters (deterministic) -------------------------
def init_params(key):
    keys = jax.random.split(key, 64)
    it = iter(keys)

    def w(shape, scale=0.02):
        return (scale * jax.random.normal(next(it), shape)).astype(jnp.float32)

    params = {
        "word_emb": w((VOCAB, HIDDEN)),
        "pos_emb": w((MAX_POS, HIDDEN)),
        "type_emb": w((TYPE_VOCAB, HIDDEN)),
        "emb_ln_g": jnp.ones((1, HIDDEN), jnp.float32),
        "emb_ln_b": jnp.zeros((1, HIDDEN), jnp.float32),
        # encoder layers stacked along a leading layer axis; Wq/Wk/Wv fused.
        "wqkv": w((NUM_LAYERS, HIDDEN, 3 * HIDDEN)),
        "bqkv": jnp.zeros((NUM_LAYERS, 1, 3 * HIDDEN), jnp.float32),
        "wo": w((NUM_LAYERS, HIDDEN, HIDDEN)),
        "bo": jnp.zeros((NUM_LAYERS, 1, HIDDEN), jnp.float32),
        "ln1_g": jnp.ones((NUM_LAYERS, 1, HIDDEN), jnp.float32),
        "ln1_b": jnp.zeros((NUM_LAYERS, 1, HIDDEN), jnp.float32),
        "w1": w((NUM_LAYERS, HIDDEN, INTERMEDIATE)),
        "b1": jnp.zeros((NUM_LAYERS, 1, INTERMEDIATE), jnp.float32),
        "w2": w((NUM_LAYERS, INTERMEDIATE, HIDDEN)),
        "b2": jnp.zeros((NUM_LAYERS, 1, HIDDEN), jnp.float32),
        "ln2_g": jnp.ones((NUM_LAYERS, 1, HIDDEN), jnp.float32),
        "ln2_b": jnp.zeros((NUM_LAYERS, 1, HIDDEN), jnp.float32),
        "pool_w": w((HIDDEN, HIDDEN)),
        "pool_b": jnp.zeros((1, HIDDEN), jnp.float32),
        # classifier (weight_norm Linear -> ReLU -> weight_norm Linear)
        "cls_v1": w((HIDDEN, CLS_HID)),
        "cls_g1": jnp.abs(w((CLS_HID,))) + 1.0,
        "cls_b1": jnp.zeros((1, CLS_HID), jnp.float32),
        "cls_v2": w((CLS_HID, NUM_ANSWERS)),
        "cls_g2": jnp.abs(w((NUM_ANSWERS,))) + 1.0,
        "cls_b2": jnp.zeros((1, NUM_ANSWERS), jnp.float32),
    }
    return params


def _weight_norm_w(v, g):
    """PyTorch weight_norm (dim=0 on the (out,in) weight) == per-output-column
    normalization of our (in, out) layout."""
    norm = jnp.sqrt(jnp.sum(v * v, axis=0, keepdims=True))
    return v * (g[None, :] / norm)


def prepare_params(raw):
    """Fold weight_norm and pack every weight/bias into two VMEM-friendly blobs."""
    mats = {
        "word_emb": raw["word_emb"],
        "pos_emb": raw["pos_emb"],
        "type_emb": raw["type_emb"],
        "pool_w": raw["pool_w"],
        "cls_w1": _weight_norm_w(raw["cls_v1"], raw["cls_g1"]),
        "cls_w2": _weight_norm_w(raw["cls_v2"], raw["cls_g2"]),
    }
    vecs = {
        "emb_ln_g": raw["emb_ln_g"], "emb_ln_b": raw["emb_ln_b"],
        "pool_b": raw["pool_b"], "cls_b1": raw["cls_b1"], "cls_b2": raw["cls_b2"],
    }
    for l in range(NUM_LAYERS):
        mats[f"wqkv{l}"] = raw["wqkv"][l]
        mats[f"wo{l}"] = raw["wo"][l]
        mats[f"w1{l}"] = raw["w1"][l]
        mats[f"w2{l}"] = raw["w2"][l]
        vecs[f"bqkv{l}"] = raw["bqkv"][l]
        vecs[f"bo{l}"] = raw["bo"][l]
        vecs[f"ln1_g{l}"] = raw["ln1_g"][l]
        vecs[f"ln1_b{l}"] = raw["ln1_b"][l]
        vecs[f"b1{l}"] = raw["b1"][l]
        vecs[f"b2{l}"] = raw["b2"][l]
        vecs[f"ln2_g{l}"] = raw["ln2_g"][l]
        vecs[f"ln2_b{l}"] = raw["ln2_b"][l]

    wblob = jnp.zeros((W_ROWS, LANES), jnp.float32)
    for name, (off, r, c) in W_LAYOUT.items():
        wblob = wblob.at[off:off + r, 0:c].set(mats[name].astype(jnp.float32))
    vblob = jnp.zeros((V_ROWS, LANES), jnp.float32)
    for name, (row, c) in V_LAYOUT.items():
        vblob = vblob.at[row:row + 1, 0:c].set(
            vecs[name].reshape(1, c).astype(jnp.float32))
    return {"wblob": wblob, "vblob": vblob}


# TODO(synk): freeze_bert / requires_grad bookkeeping and dropout in __init__
# are training-only concerns with no forward-pass effect; not represented here.

if __name__ == "__main__":
    B, S = 2, 8
    key = jax.random.PRNGKey(0)
    k_param, k_ids, k_type = jax.random.split(key, 3)

    params = prepare_params(init_params(k_param))
    input_ids = jax.random.randint(k_ids, (B, S), 0, VOCAB, dtype=jnp.int32)
    input_token_type = jax.random.randint(k_type, (B, S), 0, TYPE_VOCAB,
                                          dtype=jnp.int32)
    # second sequence has two padding positions masked out
    input_mask = jnp.array([[1, 1, 1, 1, 1, 1, 1, 1],
                            [1, 1, 1, 1, 1, 1, 0, 0]], dtype=jnp.int32)

    logits, attention = bert_vqa_forward_jit(params, input_ids, input_mask,
                                             input_token_type)
    jax.block_until_ready((logits, attention))

    assert logits.shape == (B, NUM_ANSWERS)
    assert attention.shape == (NUM_LAYERS, B, NUM_HEADS, S, S)
    # softmax rows sum to 1 and masked keys get ~0 probability
    assert jnp.allclose(jnp.sum(attention, axis=-1), 1.0, atol=1e-5)
    assert float(jnp.max(attention[:, 1, :, :, 6:])) < 1e-6
    print("KERNEL_OK")
</pallas_src>

<mosaic_0001>
module attributes {stable_mosaic.version = 11 : i64} {
  func.func @_fused_forward_kernel(%arg0: i32, %arg1: memref<16x3xi32, #tpu.memory_space<vmem>>, %arg2: memref<2x16xi32, #tpu.memory_space<vmem>>, %arg3: memref<528x128xf32, #tpu.memory_space<vmem>>, %arg4: memref<24x128xf32, #tpu.memory_space<vmem>>, %arg5: memref<2x10xf32, #tpu.memory_space<vmem>>, %arg6: memref<32x32xf32, #tpu.memory_space<vmem>>) attributes {dimension_semantics = [#tpu.dimension_semantics<arbitrary>], iteration_bounds = array<i64: 1>, scalar_prefetch = 0 : i64, scratch_operands = 0 : i64, tpu.core_type = #tpu.core_type<tc>, window_params = [{pipeline_mode = #tpu.pipeline_mode<synchronous>, transform_indices = @transform_0, window_bounds = array<i64: 16, 3>}, {pipeline_mode = #tpu.pipeline_mode<synchronous>, transform_indices = @transform_1, window_bounds = array<i64: 2, 16>}, {pipeline_mode = #tpu.pipeline_mode<synchronous>, transform_indices = @transform_2, window_bounds = array<i64: 528, 128>}, {pipeline_mode = #tpu.pipeline_mode<synchronous>, transform_indices = @transform_3, window_bounds = array<i64: 24, 128>}, {pipeline_mode = #tpu.pipeline_mode<synchronous>, transform_indices = @transform_4, window_bounds = array<i64: 2, 10>}, {pipeline_mode = #tpu.pipeline_mode<synchronous>, transform_indices = @transform_5, window_bounds = array<i64: 32, 32>}]} {
    %c0 = arith.constant 0 : index
    %c0_0 = arith.constant 0 : index
    %0 = vector.load %arg1[%c0, %c0_0] : memref<16x3xi32, #tpu.memory_space<vmem>>, vector<16x1xi32>
    %c0_1 = arith.constant 0 : index
    %c1 = arith.constant 1 : index
    %1 = vector.load %arg1[%c0_1, %c1] : memref<16x3xi32, #tpu.memory_space<vmem>>, vector<16x1xi32>
    %c0_2 = arith.constant 0 : index
    %c2 = arith.constant 2 : index
    %2 = vector.load %arg1[%c0_2, %c2] : memref<16x3xi32, #tpu.memory_space<vmem>>, vector<16x1xi32>
    %3 = tpu.iota {dimensions = array<i32: 1>} : vector<16x56xi32>
    %4 = vector.broadcast %0 : vector<16x1xi32> to vector<16x56xi32>
    %5 = arith.cmpi eq, %4, %3 : vector<16x56xi32>
    %cst = arith.constant 1.000000e+00 : f32
    %cst_3 = arith.constant 0.000000e+00 : f32
    %6 = vector.broadcast %cst : f32 to vector<16x56xf32>
    %7 = vector.broadcast %cst_3 : f32 to vector<16x56xf32>
    %8 = arith.select %5, %6, %7 : vector<16x56xi1>, vector<16x56xf32>
    %c0_4 = arith.constant 0 : index
    %c0_5 = arith.constant 0 : index
    %9 = vector.load %arg3[%c0_4, %c0_5] : memref<528x128xf32, #tpu.memory_space<vmem>>, vector<56x32xf32>
    %cst_6 = arith.constant dense<0.000000e+00> : vector<16x32xf32>
    %10 = tpu.matmul %8, %9, %cst_6 {dimension_numbers = #tpu.dot_dimension_numbers<[1], [0], [0], [1], [0, 0, 1, 1], [], []>} : vector<16x56xf32>, vector<56x32xf32>, vector<16x32xf32> -> vector<16x32xf32>
    %c0_i32 = arith.constant 0 : i32
    %11 = vector.broadcast %c0_i32 : i32 to vector<16x1xi32>
    %12 = arith.cmpi eq, %1, %11 : vector<16x1xi32>
    %c72 = arith.constant 72 : index
    %c0_7 = arith.constant 0 : index
    %13 = vector.load %arg3[%c72, %c0_7] : memref<528x128xf32, #tpu.memory_space<vmem>>, vector<1x32xf32>
    %c73 = arith.constant 73 : index
    %c0_8 = arith.constant 0 : index
    %14 = vector.load %arg3[%c73, %c0_8] : memref<528x128xf32, #tpu.memory_space<vmem>>, vector<1x32xf32>
    %15 = vector.shape_cast %12 : vector<16x1xi1> to vector<16x1xi1>
    %16 = vector.broadcast %15 : vector<16x1xi1> to vector<16x32xi1>
    %17 = vector.shape_cast %13 : vector<1x32xf32> to vector<1x32xf32>
    %18 = vector.broadcast %17 : vector<1x32xf32> to vector<16x32xf32>
    %19 = vector.shape_cast %14 : vector<1x32xf32> to vector<1x32xf32>
    %20 = vector.broadcast %19 : vector<1x32xf32> to vector<16x32xf32>
    %21 = arith.select %16, %18, %20 : vector<16x32xi1>, vector<16x32xf32>
    %c56 = arith.constant 56 : index
    %c0_9 = arith.constant 0 : index
    %22 = vector.load %arg3[%c56, %c0_9] : memref<528x128xf32, #tpu.memory_space<vmem>>, vector<8x32xf32>
    %23 = tpu.concatenate %22, %22 in 0 : vector<8x32xf32>, vector<8x32xf32> -> vector<16x32xf32>
    %24 = arith.addf %10, %21 : vector<16x32xf32>
    %25 = arith.addf %24, %23 : vector<16x32xf32>
    %c0_10 = arith.constant 0 : index
    %c0_11 = arith.constant 0 : index
    %26 = vector.load %arg4[%c0_10, %c0_11] : memref<24x128xf32, #tpu.memory_space<vmem>>, vector<1x32xf32>
    %c1_12 = arith.constant 1 : index
    %c0_13 = arith.constant 0 : index
    %27 = vector.load %arg4[%c1_12, %c0_13] : memref<24x128xf32, #tpu.memory_space<vmem>>, vector<1x32xf32>
    %cst_14 = arith.constant dense<0.000000e+00> : vector<16xf32>
    %28 = vector.multi_reduction <add>, %25, %cst_14 [1] : vector<16x32xf32> to vector<16xf32>
    %29 = vector.shape_cast %28 : vector<16xf32> to vector<16x1xf32>
    %cst_15 = arith.constant 3.200000e+01 : f32
    %30 = vector.broadcast %cst_15 : f32 to vector<16x1xf32>
    %31 = arith.divf %29, %30 : vector<16x1xf32>
    %32 = vector.broadcast %31 : vector<16x1xf32> to vector<16x32xf32>
    %33 = arith.subf %25, %32 : vector<16x32xf32>
    %34 = arith.mulf %33, %33 : vector<16x32xf32>
    %cst_16 = arith.constant dense<0.000000e+00> : vector<16xf32>
    %35 = vector.multi_reduction <add>, %34, %cst_16 [1] : vector<16x32xf32> to vector<16xf32>
    %36 = vector.shape_cast %35 : vector<16xf32> to vector<16x1xf32>
    %cst_17 = arith.constant 3.200000e+01 : f32
    %37 = vector.broadcast %cst_17 : f32 to vector<16x1xf32>
    %38 = arith.divf %36, %37 : vector<16x1xf32>
    %cst_18 = arith.constant 9.99999996E-13 : f32
    %39 = vector.broadcast %cst_18 : f32 to vector<16x1xf32>
    %40 = arith.addf %38, %39 : vector<16x1xf32>
    %41 = math.rsqrt %40 : vector<16x1xf32>
    %42 = vector.broadcast %41 : vector<16x1xf32> to vector<16x32xf32>
    %43 = arith.mulf %33, %42 : vector<16x32xf32>
    %44 = vector.broadcast %26 : vector<1x32xf32> to vector<16x32xf32>
    %45 = arith.mulf %43, %44 : vector<16x32xf32>
    %46 = vector.broadcast %27 : vector<1x32xf32> to vector<16x32xf32>
    %47 = arith.addf %45, %46 : vector<16x32xf32>
    %c0_19 = arith.constant 0 : index
    %c0_20 = arith.constant 0 : index
    %48 = vector.load %arg2[%c0_19, %c0_20] : memref<2x16xi32, #tpu.memory_space<vmem>>, vector<1x16xi32>
    %49 = arith.sitofp %48 : vector<1x16xi32> to vector<1x16xf32>
    %c1_21 = arith.constant 1 : index
    %c0_22 = arith.constant 0 : index
    %50 = vector.load %arg2[%c1_21, %c0_22] : memref<2x16xi32, #tpu.memory_space<vmem>>, vector<1x16xi32>
    %51 = vector.broadcast %2 : vector<16x1xi32> to vector<16x16xi32>
    %52 = vector.broadcast %50 : vector<1x16xi32> to vector<16x16xi32>
    %53 = arith.cmpi eq, %51, %52 : vector<16x16xi32>
    %cst_23 = arith.constant 0.000000e+00 : f32
    %cst_24 = arith.constant -1.000000e+04 : f32
    %54 = vector.broadcast %cst_23 : f32 to vector<16x16xf32>
    %55 = vector.broadcast %cst_24 : f32 to vector<16x16xf32>
    %56 = arith.select %53, %54, %55 : vector<16x16xi1>, vector<16x16xf32>
    %cst_25 = arith.constant 1.000000e+00 : f32
    %57 = vector.broadcast %cst_25 : f32 to vector<1x16xf32>
    %58 = arith.subf %57, %49 : vector<1x16xf32>
    %cst_26 = arith.constant -1.000000e+04 : f32
    %59 = vector.broadcast %cst_26 : f32 to vector<1x16xf32>
    %60 = arith.mulf %58, %59 : vector<1x16xf32>
    %61 = vector.broadcast %60 : vector<1x16xf32> to vector<16x16xf32>
    %62 = arith.addf %56, %61 : vector<16x16xf32>
    %c80 = arith.constant 80 : index
    %c0_27 = arith.constant 0 : index
    %63 = vector.load %arg3[%c80, %c0_27] : memref<528x128xf32, #tpu.memory_space<vmem>>, vector<32x96xf32>
    %cst_28 = arith.constant dense<0.000000e+00> : vector<16x96xf32>
    %64 = tpu.matmul %47, %63, %cst_28 {dimension_numbers = #tpu.dot_dimension_numbers<[1], [0], [0], [1], [0, 0, 1, 1], [], []>} : vector<16x32xf32>, vector<32x96xf32>, vector<16x96xf32> -> vector<16x96xf32>
    %c2_29 = arith.constant 2 : index
    %c0_30 = arith.constant 0 : index
    %65 = vector.load %arg4[%c2_29, %c0_30] : memref<24x128xf32, #tpu.memory_space<vmem>>, vector<1x96xf32>
    %66 = vector.broadcast %65 : vector<1x96xf32> to vector<16x96xf32>
    %67 = arith.addf %64, %66 : vector<16x96xf32>
    %68 = vector.extract_strided_slice %67 {offsets = [0, 0], sizes = [16, 8], strides = [1, 1]} : vector<16x96xf32> to vector<16x8xf32>
    %69 = vector.extract_strided_slice %67 {offsets = [0, 32], sizes = [16, 8], strides = [1, 1]} : vector<16x96xf32> to vector<16x8xf32>
    %70 = vector.extract_strided_slice %67 {offsets = [0, 64], sizes = [16, 8], strides = [1, 1]} : vector<16x96xf32> to vector<16x8xf32>
    %cst_31 = arith.constant dense<0.000000e+00> : vector<16x16xf32>
    %71 = tpu.matmul %68, %69, %cst_31 {dimension_numbers = #tpu.dot_dimension_numbers<[1], [1], [0], [0], [0, 0, 1, 0], [], []>} : vector<16x8xf32>, vector<16x8xf32>, vector<16x16xf32> -> vector<16x16xf32>
    %cst_32 = arith.constant 0.353553385 : f32
    %72 = vector.broadcast %cst_32 : f32 to vector<16x16xf32>
    %73 = arith.mulf %71, %72 : vector<16x16xf32>
    %74 = arith.addf %73, %62 : vector<16x16xf32>
    %cst_33 = arith.constant dense<0xFF800000> : vector<16xf32>
    %75 = vector.multi_reduction <maximumf>, %74, %cst_33 [1] : vector<16x16xf32> to vector<16xf32>
    %76 = vector.shape_cast %75 : vector<16xf32> to vector<16x1xf32>
    %77 = vector.broadcast %76 : vector<16x1xf32> to vector<16x16xf32>
    %78 = arith.subf %74, %77 : vector<16x16xf32>
    %79 = math.exp %78 : vector<16x16xf32>
    %cst_34 = arith.constant dense<0.000000e+00> : vector<16xf32>
    %80 = vector.multi_reduction <add>, %79, %cst_34 [1] : vector<16x16xf32> to vector<16xf32>
    %81 = vector.shape_cast %80 : vector<16xf32> to vector<16x1xf32>
    %82 = tpu.reciprocal %81 : vector<16x1xf32> -> vector<16x1xf32>
    %83 = vector.broadcast %82 : vector<16x1xf32> to vector<16x16xf32>
    %84 = arith.mulf %79, %83 : vector<16x16xf32>
    %cst_35 = arith.constant dense<0.000000e+00> : vector<16x8xf32>
    %85 = tpu.matmul %84, %70, %cst_35 {dimension_numbers = #tpu.dot_dimension_numbers<[1], [0], [0], [1], [0, 0, 1, 1], [], []>} : vector<16x16xf32>, vector<16x8xf32>, vector<16x8xf32> -> vector<16x8xf32>
    %86 = vector.extract_strided_slice %67 {offsets = [0, 8], sizes = [16, 8], strides = [1, 1]} : vector<16x96xf32> to vector<16x8xf32>
    %87 = vector.extract_strided_slice %67 {offsets = [0, 40], sizes = [16, 8], strides = [1, 1]} : vector<16x96xf32> to vector<16x8xf32>
    %88 = vector.extract_strided_slice %67 {offsets = [0, 72], sizes = [16, 8], strides = [1, 1]} : vector<16x96xf32> to vector<16x8xf32>
    %cst_36 = arith.constant dense<0.000000e+00> : vector<16x16xf32>
    %89 = tpu.matmul %86, %87, %cst_36 {dimension_numbers = #tpu.dot_dimension_numbers<[1], [1], [0], [0], [0, 0, 1, 0], [], []>} : vector<16x8xf32>, vector<16x8xf32>, vector<16x16xf32> -> vector<16x16xf32>
    %cst_37 = arith.constant 0.353553385 : f32
    %90 = vector.broadcast %cst_37 : f32 to vector<16x16xf32>
    %91 = arith.mulf %89, %90 : vector<16x16xf32>
    %92 = arith.addf %91, %62 : vector<16x16xf32>
    %cst_38 = arith.constant dense<0xFF800000> : vector<16xf32>
    %93 = vector.multi_reduction <maximumf>, %92, %cst_38 [1] : vector<16x16xf32> to vector<16xf32>
    %94 = vector.shape_cast %93 : vector<16xf32> to vector<16x1xf32>
    %95 = vector.broadcast %94 : vector<16x1xf32> to vector<16x16xf32>
    %96 = arith.subf %92, %95 : vector<16x16xf32>
    %97 = math.exp %96 : vector<16x16xf32>
    %cst_39 = arith.constant dense<0.000000e+00> : vector<16xf32>
    %98 = vector.multi_reduction <add>, %97, %cst_39 [1] : vector<16x16xf32> to vector<16xf32>
    %99 = vector.shape_cast %98 : vector<16xf32> to vector<16x1xf32>
    %100 = tpu.reciprocal %99 : vector<16x1xf32> -> vector<16x1xf32>
    %101 = vector.broadcast %100 : vector<16x1xf32> to vector<16x16xf32>
    %102 = arith.mulf %97, %101 : vector<16x16xf32>
    %cst_40 = arith.constant dense<0.000000e+00> : vector<16x8xf32>
    %103 = tpu.matmul %102, %88, %cst_40 {dimension_numbers = #tpu.dot_dimension_numbers<[1], [0], [0], [1], [0, 0, 1, 1], [], []>} : vector<16x16xf32>, vector<16x8xf32>, vector<16x8xf32> -> vector<16x8xf32>
    %104 = vector.extract_strided_slice %67 {offsets = [0, 16], sizes = [16, 8], strides = [1, 1]} : vector<16x96xf32> to vector<16x8xf32>
    %105 = vector.extract_strided_slice %67 {offsets = [0, 48], sizes = [16, 8], strides = [1, 1]} : vector<16x96xf32> to vector<16x8xf32>
    %106 = vector.extract_strided_slice %67 {offsets = [0, 80], sizes = [16, 8], strides = [1, 1]} : vector<16x96xf32> to vector<16x8xf32>
    %cst_41 = arith.constant dense<0.000000e+00> : vector<16x16xf32>
    %107 = tpu.matmul %104, %105, %cst_41 {dimension_numbers = #tpu.dot_dimension_numbers<[1], [1], [0], [0], [0, 0, 1, 0], [], []>} : vector<16x8xf32>, vector<16x8xf32>, vector<16x16xf32> -> vector<16x16xf32>
    %cst_42 = arith.constant 0.353553385 : f32
    %108 = vector.broadcast %cst_42 : f32 to vector<16x16xf32>
    %109 = arith.mulf %107, %108 : vector<16x16xf32>
    %110 = arith.addf %109, %62 : vector<16x16xf32>
    %cst_43 = arith.constant dense<0xFF800000> : vector<16xf32>
    %111 = vector.multi_reduction <maximumf>, %110, %cst_43 [1] : vector<16x16xf32> to vector<16xf32>
    %112 = vector.shape_cast %111 : vector<16xf32> to vector<16x1xf32>
    %113 = vector.broadcast %112 : vector<16x1xf32> to vector<16x16xf32>
    %114 = arith.subf %110, %113 : vector<16x16xf32>
    %115 = math.exp %114 : vector<16x16xf32>
    %cst_44 = arith.constant dense<0.000000e+00> : vector<16xf32>
    %116 = vector.multi_reduction <add>, %115, %cst_44 [1] : vector<16x16xf32> to vector<16xf32>
    %117 = vector.shape_cast %116 : vector<16xf32> to vector<16x1xf32>
    %118 = tpu.reciprocal %117 : vector<16x1xf32> -> vector<16x1xf32>
    %119 = vector.broadcast %118 : vector<16x1xf32> to vector<16x16xf32>
    %120 = arith.mulf %115, %119 : vector<16x16xf32>
    %cst_45 = arith.constant dense<0.000000e+00> : vector<16x8xf32>
    %121 = tpu.matmul %120, %106, %cst_45 {dimension_numbers = #tpu.dot_dimension_numbers<[1], [0], [0], [1], [0, 0, 1, 1], [], []>} : vector<16x16xf32>, vector<16x8xf32>, vector<16x8xf32> -> vector<16x8xf32>
    %122 = vector.extract_strided_slice %67 {offsets = [0, 24], sizes = [16, 8], strides = [1, 1]} : vector<16x96xf32> to vector<16x8xf32>
    %123 = vector.extract_strided_slice %67 {offsets = [0, 56], sizes = [16, 8], strides = [1, 1]} : vector<16x96xf32> to vector<16x8xf32>
    %124 = vector.extract_strided_slice %67 {offsets = [0, 88], sizes = [16, 8], strides = [1, 1]} : vector<16x96xf32> to vector<16x8xf32>
    %cst_46 = arith.constant dense<0.000000e+00> : vector<16x16xf32>
    %125 = tpu.matmul %122, %123, %cst_46 {dimension_numbers = #tpu.dot_dimension_numbers<[1], [1], [0], [0], [0, 0, 1, 0], [], []>} : vector<16x8xf32>, vector<16x8xf32>, vector<16x16xf32> -> vector<16x16xf32>
    %cst_47 = arith.constant 0.353553385 : f32
    %126 = vector.broadcast %cst_47 : f32 to vector<16x16xf32>
    %127 = arith.mulf %125, %126 : vector<16x16xf32>
    %128 = arith.addf %127, %62 : vector<16x16xf32>
    %cst_48 = arith.constant dense<0xFF800000> : vector<16xf32>
    %129 = vector.multi_reduction <maximumf>, %128, %cst_48 [1] : vector<16x16xf32> to vector<16xf32>
    %130 = vector.shape_cast %129 : vector<16xf32> to vector<16x1xf32>
    %131 = vector.broadcast %130 : vector<16x1xf32> to vector<16x16xf32>
    %132 = arith.subf %128, %131 : vector<16x16xf32>
    %133 = math.exp %132 : vector<16x16xf32>
    %cst_49 = arith.constant dense<0.000000e+00> : vector<16xf32>
    %134 = vector.multi_reduction <add>, %133, %cst_49 [1] : vector<16x16xf32> to vector<16xf32>
    %135 = vector.shape_cast %134 : vector<16xf32> to vector<16x1xf32>
    %136 = tpu.reciprocal %135 : vector<16x1xf32> -> vector<16x1xf32>
    %137 = vector.broadcast %136 : vector<16x1xf32> to vector<16x16xf32>
    %138 = arith.mulf %133, %137 : vector<16x16xf32>
    %cst_50 = arith.constant dense<0.000000e+00> : vector<16x8xf32>
    %139 = tpu.matmul %138, %124, %cst_50 {dimension_numbers = #tpu.dot_dimension_numbers<[1], [0], [0], [1], [0, 0, 1, 1], [], []>} : vector<16x16xf32>, vector<16x8xf32>, vector<16x8xf32> -> vector<16x8xf32>
    %140 = vector.extract_strided_slice %84 {offsets = [0, 0], sizes = [8, 8], strides = [1, 1]} : vector<16x16xf32> to vector<8x8xf32>
    %141 = vector.extract_strided_slice %102 {offsets = [0, 0], sizes = [8, 8], strides = [1, 1]} : vector<16x16xf32> to vector<8x8xf32>
    %142 = vector.extract_strided_slice %120 {offsets = [0, 0], sizes = [8, 8], strides = [1, 1]} : vector<16x16xf32> to vector<8x8xf32>
    %143 = vector.extract_strided_slice %138 {offsets = [0, 0], sizes = [8, 8], strides = [1, 1]} : vector<16x16xf32> to vector<8x8xf32>
    %144 = tpu.concatenate %140, %141, %142, %143 in 1 : vector<8x8xf32>, vector<8x8xf32>, vector<8x8xf32>, vector<8x8xf32> -> vector<8x32xf32>
    %c0_51 = arith.constant 0 : index
    %c0_52 = arith.constant 0 : index
    %145 = vector.load %arg6[%c0_51, %c0_52] : memref<32x32xf32, #tpu.memory_space<vmem>>, vector<8x32xf32>
    tpu.vector_store %arg6[%c0_51, %c0_52], %144 {strides = array<i32>} : memref<32x32xf32, #tpu.memory_space<vmem>>, vector<8x32xf32>,
    %146 = vector.extract_strided_slice %84 {offsets = [8, 8], sizes = [8, 8], strides = [1, 1]} : vector<16x16xf32> to vector<8x8xf32>
    %147 = vector.extract_strided_slice %102 {offsets = [8, 8], sizes = [8, 8], strides = [1, 1]} : vector<16x16xf32> to vector<8x8xf32>
    %148 = vector.extract_strided_slice %120 {offsets = [8, 8], sizes = [8, 8], strides = [1, 1]} : vector<16x16xf32> to vector<8x8xf32>
    %149 = vector.extract_strided_slice %138 {offsets = [8, 8], sizes = [8, 8], strides = [1, 1]} : vector<16x16xf32> to vector<8x8xf32>
    %150 = tpu.concatenate %146, %147, %148, %149 in 1 : vector<8x8xf32>, vector<8x8xf32>, vector<8x8xf32>, vector<8x8xf32> -> vector<8x32xf32>
    %c8 = arith.constant 8 : index
    %c0_53 = arith.constant 0 : index
    %151 = vector.load %arg6[%c8, %c0_53] : memref<32x32xf32, #tpu.memory_space<vmem>>, vector<8x32xf32>
    tpu.vector_store %arg6[%c8, %c0_53], %150 {strides = array<i32>} : memref<32x32xf32, #tpu.memory_space<vmem>>, vector<8x32xf32>,
    %152 = tpu.concatenate %85, %103, %121, %139 in 1 : vector<16x8xf32>, vector<16x8xf32>, vector<16x8xf32>, vector<16x8xf32> -> vector<16x32xf32>
    %c112 = arith.constant 112 : index
    %c0_54 = arith.constant 0 : index
    %153 = vector.load %arg3[%c112, %c0_54] : memref<528x128xf32, #tpu.memory_space<vmem>>, vector<32x32xf32>
    %cst_55 = arith.constant dense<0.000000e+00> : vector<16x32xf32>
    %154 = tpu.matmul %152, %153, %cst_55 {dimension_numbers = #tpu.dot_dimension_numbers<[1], [0], [0], [1], [0, 0, 1, 1], [], []>} : vector<16x32xf32>, vector<32x32xf32>, vector<16x32xf32> -> vector<16x32xf32>
    %c3 = arith.constant 3 : index
    %c0_56 = arith.constant 0 : index
    %155 = vector.load %arg4[%c3, %c0_56] : memref<24x128xf32, #tpu.memory_space<vmem>>, vector<1x32xf32>
    %156 = vector.broadcast %155 : vector<1x32xf32> to vector<16x32xf32>
    %157 = arith.addf %154, %156 : vector<16x32xf32>
    %158 = arith.addf %47, %157 : vector<16x32xf32>
    %c4 = arith.constant 4 : index
    %c0_57 = arith.constant 0 : index
    %159 = vector.load %arg4[%c4, %c0_57] : memref<24x128xf32, #tpu.memory_space<vmem>>, vector<1x32xf32>
    %c5 = arith.constant 5 : index
    %c0_58 = arith.constant 0 : index
    %160 = vector.load %arg4[%c5, %c0_58] : memref<24x128xf32, #tpu.memory_space<vmem>>, vector<1x32xf32>
    %cst_59 = arith.constant dense<0.000000e+00> : vector<16xf32>
    %161 = vector.multi_reduction <add>, %158, %cst_59 [1] : vector<16x32xf32> to vector<16xf32>
    %162 = vector.shape_cast %161 : vector<16xf32> to vector<16x1xf32>
    %cst_60 = arith.constant 3.200000e+01 : f32
    %163 = vector.broadcast %cst_60 : f32 to vector<16x1xf32>
    %164 = arith.divf %162, %163 : vector<16x1xf32>
    %165 = vector.broadcast %164 : vector<16x1xf32> to vector<16x32xf32>
    %166 = arith.subf %158, %165 : vector<16x32xf32>
    %167 = arith.mulf %166, %166 : vector<16x32xf32>
    %cst_61 = arith.constant dense<0.000000e+00> : vector<16xf32>
    %168 = vector.multi_reduction <add>, %167, %cst_61 [1] : vector<16x32xf32> to vector<16xf32>
    %169 = vector.shape_cast %168 : vector<16xf32> to vector<16x1xf32>
    %cst_62 = arith.constant 3.200000e+01 : f32
    %170 = vector.broadcast %cst_62 : f32 to vector<16x1xf32>
    %171 = arith.divf %169, %170 : vector<16x1xf32>
    %cst_63 = arith.constant 9.99999996E-13 : f32
    %172 = vector.broadcast %cst_63 : f32 to vector<16x1xf32>
    %173 = arith.addf %171, %172 : vector<16x1xf32>
    %174 = math.rsqrt %173 : vector<16x1xf32>
    %175 = vector.broadcast %174 : vector<16x1xf32> to vector<16x32xf32>
    %176 = arith.mulf %166, %175 : vector<16x32xf32>
    %177 = vector.broadcast %159 : vector<1x32xf32> to vector<16x32xf32>
    %178 = arith.mulf %176, %177 : vector<16x32xf32>
    %179 = vector.broadcast %160 : vector<1x32xf32> to vector<16x32xf32>
    %180 = arith.addf %178, %179 : vector<16x32xf32>
    %c144 = arith.constant 144 : index
    %c0_64 = arith.constant 0 : index
    %181 = vector.load %arg3[%c144, %c0_64] : memref<528x128xf32, #tpu.memory_space<vmem>>, vector<32x64xf32>
    %cst_65 = arith.constant dense<0.000000e+00> : vector<16x64xf32>
    %182 = tpu.matmul %180, %181, %cst_65 {dimension_numbers = #tpu.dot_dimension_numbers<[1], [0], [0], [1], [0, 0, 1, 1], [], []>} : vector<16x32xf32>, vector<32x64xf32>, vector<16x64xf32> -> vector<16x64xf32>
    %c6 = arith.constant 6 : index
    %c0_66 = arith.constant 0 : index
    %183 = vector.load %arg4[%c6, %c0_66] : memref<24x128xf32, #tpu.memory_space<vmem>>, vector<1x64xf32>
    %184 = vector.broadcast %183 : vector<1x64xf32> to vector<16x64xf32>
    %185 = arith.addf %182, %184 : vector<16x64xf32>
    %186 = arith.mulf %185, %185 : vector<16x64xf32>
    %187 = arith.mulf %185, %186 : vector<16x64xf32>
    %cst_67 = arith.constant 4.471500e-02 : f32
    %188 = vector.broadcast %cst_67 : f32 to vector<16x64xf32>
    %189 = arith.mulf %188, %187 : vector<16x64xf32>
    %190 = arith.addf %185, %189 : vector<16x64xf32>
    %cst_68 = arith.constant 0.797884583 : f32
    %191 = vector.broadcast %cst_68 : f32 to vector<16x64xf32>
    %192 = arith.mulf %191, %190 : vector<16x64xf32>
    %193 = math.tanh %192 : vector<16x64xf32>
    %cst_69 = arith.constant 1.000000e+00 : f32
    %194 = vector.broadcast %cst_69 : f32 to vector<16x64xf32>
    %195 = arith.addf %194, %193 : vector<16x64xf32>
    %cst_70 = arith.constant 5.000000e-01 : f32
    %196 = vector.broadcast %cst_70 : f32 to vector<16x64xf32>
    %197 = arith.mulf %196, %195 : vector<16x64xf32>
    %198 = arith.mulf %185, %197 : vector<16x64xf32>
    %c176 = arith.constant 176 : index
    %c0_71 = arith.constant 0 : index
    %199 = vector.load %arg3[%c176, %c0_71] : memref<528x128xf32, #tpu.memory_space<vmem>>, vector<64x32xf32>
    %cst_72 = arith.constant dense<0.000000e+00> : vector<16x32xf32>
    %200 = tpu.matmul %198, %199, %cst_72 {dimension_numbers = #tpu.dot_dimension_numbers<[1], [0], [0], [1], [0, 0, 1, 1], [], []>} : vector<16x64xf32>, vector<64x32xf32>, vector<16x32xf32> -> vector<16x32xf32>
    %c7 = arith.constant 7 : index
    %c0_73 = arith.constant 0 : index
    %201 = vector.load %arg4[%c7, %c0_73] : memref<24x128xf32, #tpu.memory_space<vmem>>, vector<1x32xf32>
    %202 = vector.broadcast %201 : vector<1x32xf32> to vector<16x32xf32>
    %203 = arith.addf %200, %202 : vector<16x32xf32>
    %204 = arith.addf %180, %203 : vector<16x32xf32>
    %c8_74 = arith.constant 8 : index
    %c0_75 = arith.constant 0 : index
    %205 = vector.load %arg4[%c8_74, %c0_75] : memref<24x128xf32, #tpu.memory_space<vmem>>, vector<1x32xf32>
    %c9 = arith.constant 9 : index
    %c0_76 = arith.constant 0 : index
    %206 = vector.load %arg4[%c9, %c0_76] : memref<24x128xf32, #tpu.memory_space<vmem>>, vector<1x32xf32>
    %cst_77 = arith.constant dense<0.000000e+00> : vector<16xf32>
    %207 = vector.multi_reduction <add>, %204, %cst_77 [1] : vector<16x32xf32> to vector<16xf32>
    %208 = vector.shape_cast %207 : vector<16xf32> to vector<16x1xf32>
    %cst_78 = arith.constant 3.200000e+01 : f32
    %209 = vector.broadcast %cst_78 : f32 to vector<16x1xf32>
    %210 = arith.divf %208, %209 : vector<16x1xf32>
    %211 = vector.broadcast %210 : vector<16x1xf32> to vector<16x32xf32>
    %212 = arith.subf %204, %211 : vector<16x32xf32>
    %213 = arith.mulf %212, %212 : vector<16x32xf32>
    %cst_79 = arith.constant dense<0.000000e+00> : vector<16xf32>
    %214 = vector.multi_reduction <add>, %213, %cst_79 [1] : vector<16x32xf32> to vector<16xf32>
    %215 = vector.shape_cast %214 : vector<16xf32> to vector<16x1xf32>
    %cst_80 = arith.constant 3.200000e+01 : f32
    %216 = vector.broadcast %cst_80 : f32 to vector<16x1xf32>
    %217 = arith.divf %215, %216 : vector<16x1xf32>
    %cst_81 = arith.constant 9.99999996E-13 : f32
    %218 = vector.broadcast %cst_81 : f32 to vector<16x1xf32>
    %219 = arith.addf %217, %218 : vector<16x1xf32>
    %220 = math.rsqrt %219 : vector<16x1xf32>
    %221 = vector.broadcast %220 : vector<16x1xf32> to vector<16x32xf32>
    %222 = arith.mulf %212, %221 : vector<16x32xf32>
    %223 = vector.broadcast %205 : vector<1x32xf32> to vector<16x32xf32>
    %224 = arith.mulf %222, %223 : vector<16x32xf32>
    %225 = vector.broadcast %206 : vector<1x32xf32> to vector<16x32xf32>
    %226 = arith.addf %224, %225 : vector<16x32xf32>
    %c240 = arith.constant 240 : index
    %c0_82 = arith.constant 0 : index
    %227 = vector.load %arg3[%c240, %c0_82] : memref<528x128xf32, #tpu.memory_space<vmem>>, vector<32x96xf32>
    %cst_83 = arith.constant dense<0.000000e+00> : vector<16x96xf32>
    %228 = tpu.matmul %226, %227, %cst_83 {dimension_numbers = #tpu.dot_dimension_numbers<[1], [0], [0], [1], [0, 0, 1, 1], [], []>} : vector<16x32xf32>, vector<32x96xf32>, vector<16x96xf32> -> vector<16x96xf32>
    %c10 = arith.constant 10 : index
    %c0_84 = arith.constant 0 : index
    %229 = vector.load %arg4[%c10, %c0_84] : memref<24x128xf32, #tpu.memory_space<vmem>>, vector<1x96xf32>
    %230 = vector.broadcast %229 : vector<1x96xf32> to vector<16x96xf32>
    %231 = arith.addf %228, %230 : vector<16x96xf32>
    %232 = vector.extract_strided_slice %231 {offsets = [0, 0], sizes = [16, 8], strides = [1, 1]} : vector<16x96xf32> to vector<16x8xf32>
    %233 = vector.extract_strided_slice %231 {offsets = [0, 32], sizes = [16, 8], strides = [1, 1]} : vector<16x96xf32> to vector<16x8xf32>
    %234 = vector.extract_strided_slice %231 {offsets = [0, 64], sizes = [16, 8], strides = [1, 1]} : vector<16x96xf32> to vector<16x8xf32>
    %cst_85 = arith.constant dense<0.000000e+00> : vector<16x16xf32>
    %235 = tpu.matmul %232, %233, %cst_85 {dimension_numbers = #tpu.dot_dimension_numbers<[1], [1], [0], [0], [0, 0, 1, 0], [], []>} : vector<16x8xf32>, vector<16x8xf32>, vector<16x16xf32> -> vector<16x16xf32>
    %cst_86 = arith.constant 0.353553385 : f32
    %236 = vector.broadcast %cst_86 : f32 to vector<16x16xf32>
    %237 = arith.mulf %235, %236 : vector<16x16xf32>
    %238 = arith.addf %237, %62 : vector<16x16xf32>
    %cst_87 = arith.constant dense<0xFF800000> : vector<16xf32>
    %239 = vector.multi_reduction <maximumf>, %238, %cst_87 [1] : vector<16x16xf32> to vector<16xf32>
    %240 = vector.shape_cast %239 : vector<16xf32> to vector<16x1xf32>
    %241 = vector.broadcast %240 : vector<16x1xf32> to vector<16x16xf32>
    %242 = arith.subf %238, %241 : vector<16x16xf32>
    %243 = math.exp %242 : vector<16x16xf32>
    %cst_88 = arith.constant dense<0.000000e+00> : vector<16xf32>
    %244 = vector.multi_reduction <add>, %243, %cst_88 [1] : vector<16x16xf32> to vector<16xf32>
    %245 = vector.shape_cast %244 : vector<16xf32> to vector<16x1xf32>
    %246 = tpu.reciprocal %245 : vector<16x1xf32> -> vector<16x1xf32>
    %247 = vector.broadcast %246 : vector<16x1xf32> to vector<16x16xf32>
    %248 = arith.mulf %243, %247 : vector<16x16xf32>
    %cst_89 = arith.constant dense<0.000000e+00> : vector<16x8xf32>
    %249 = tpu.matmul %248, %234, %cst_89 {dimension_numbers = #tpu.dot_dimension_numbers<[1], [0], [0], [1], [0, 0, 1, 1], [], []>} : vector<16x16xf32>, vector<16x8xf32>, vector<16x8xf32> -> vector<16x8xf32>
    %250 = vector.extract_strided_slice %231 {offsets = [0, 8], sizes = [16, 8], strides = [1, 1]} : vector<16x96xf32> to vector<16x8xf32>
    %251 = vector.extract_strided_slice %231 {offsets = [0, 40], sizes = [16, 8], strides = [1, 1]} : vector<16x96xf32> to vector<16x8xf32>
    %252 = vector.extract_strided_slice %231 {offsets = [0, 72], sizes = [16, 8], strides = [1, 1]} : vector<16x96xf32> to vector<16x8xf32>
    %cst_90 = arith.constant dense<0.000000e+00> : vector<16x16xf32>
    %253 = tpu.matmul %250, %251, %cst_90 {dimension_numbers = #tpu.dot_dimension_numbers<[1], [1], [0], [0], [0, 0, 1, 0], [], []>} : vector<16x8xf32>, vector<16x8xf32>, vector<16x16xf32> -> vector<16x16xf32>
    %cst_91 = arith.constant 0.353553385 : f32
    %254 = vector.broadcast %cst_91 : f32 to vector<16x16xf32>
    %255 = arith.mulf %253, %254 : vector<16x16xf32>
    %256 = arith.addf %255, %62 : vector<16x16xf32>
    %cst_92 = arith.constant dense<0xFF800000> : vector<16xf32>
    %257 = vector.multi_reduction <maximumf>, %256, %cst_92 [1] : vector<16x16xf32> to vector<16xf32>
    %258 = vector.shape_cast %257 : vector<16xf32> to vector<16x1xf32>
    %259 = vector.broadcast %258 : vector<16x1xf32> to vector<16x16xf32>
    %260 = arith.subf %256, %259 : vector<16x16xf32>
    %261 = math.exp %260 : vector<16x16xf32>
    %cst_93 = arith.constant dense<0.000000e+00> : vector<16xf32>
    %262 = vector.multi_reduction <add>, %261, %cst_93 [1] : vector<16x16xf32> to vector<16xf32>
    %263 = vector.shape_cast %262 : vector<16xf32> to vector<16x1xf32>
    %264 = tpu.reciprocal %263 : vector<16x1xf32> -> vector<16x1xf32>
    %265 = vector.broadcast %264 : vector<16x1xf32> to vector<16x16xf32>
    %266 = arith.mulf %261, %265 : vector<16x16xf32>
    %cst_94 = arith.constant dense<0.000000e+00> : vector<16x8xf32>
    %267 = tpu.matmul %266, %252, %cst_94 {dimension_numbers = #tpu.dot_dimension_numbers<[1], [0], [0], [1], [0, 0, 1, 1], [], []>} : vector<16x16xf32>, vector<16x8xf32>, vector<16x8xf32> -> vector<16x8xf32>
    %268 = vector.extract_strided_slice %231 {offsets = [0, 16], sizes = [16, 8], strides = [1, 1]} : vector<16x96xf32> to vector<16x8xf32>
    %269 = vector.extract_strided_slice %231 {offsets = [0, 48], sizes = [16, 8], strides = [1, 1]} : vector<16x96xf32> to vector<16x8xf32>
    %270 = vector.extract_strided_slice %231 {offsets = [0, 80], sizes = [16, 8], strides = [1, 1]} : vector<16x96xf32> to vector<16x8xf32>
    %cst_95 = arith.constant dense<0.000000e+00> : vector<16x16xf32>
    %271 = tpu.matmul %268, %269, %cst_95 {dimension_numbers = #tpu.dot_dimension_numbers<[1], [1], [0], [0], [0, 0, 1, 0], [], []>} : vector<16x8xf32>, vector<16x8xf32>, vector<16x16xf32> -> vector<16x16xf32>
    %cst_96 = arith.constant 0.353553385 : f32
    %272 = vector.broadcast %cst_96 : f32 to vector<16x16xf32>
    %273 = arith.mulf %271, %272 : vector<16x16xf32>
    %274 = arith.addf %273, %62 : vector<16x16xf32>
    %cst_97 = arith.constant dense<0xFF800000> : vector<16xf32>
    %275 = vector.multi_reduction <maximumf>, %274, %cst_97 [1] : vector<16x16xf32> to vector<16xf32>
    %276 = vector.shape_cast %275 : vector<16xf32> to vector<16x1xf32>
    %277 = vector.broadcast %276 : vector<16x1xf32> to vector<16x16xf32>
    %278 = arith.subf %274, %277 : vector<16x16xf32>
    %279 = math.exp %278 : vector<16x16xf32>
    %cst_98 = arith.constant dense<0.000000e+00> : vector<16xf32>
    %280 = vector.multi_reduction <add>, %279, %cst_98 [1] : vector<16x16xf32> to vector<16xf32>
    %281 = vector.shape_cast %280 : vector<16xf32> to vector<16x1xf32>
    %282 = tpu.reciprocal %281 : vector<16x1xf32> -> vector<16x1xf32>
    %283 = vector.broadcast %282 : vector<16x1xf32> to vector<16x16xf32>
    %284 = arith.mulf %279, %283 : vector<16x16xf32>
    %cst_99 = arith.constant dense<0.000000e+00> : vector<16x8xf32>
    %285 = tpu.matmul %284, %270, %cst_99 {dimension_numbers = #tpu.dot_dimension_numbers<[1], [0], [0], [1], [0, 0, 1, 1], [], []>} : vector<16x16xf32>, vector<16x8xf32>, vector<16x8xf32> -> vector<16x8xf32>
    %286 = vector.extract_strided_slice %231 {offsets = [0, 24], sizes = [16, 8], strides = [1, 1]} : vector<16x96xf32> to vector<16x8xf32>
    %287 = vector.extract_strided_slice %231 {offsets = [0, 56], sizes = [16, 8], strides = [1, 1]} : vector<16x96xf32> to vector<16x8xf32>
    %288 = vector.extract_strided_slice %231 {offsets = [0, 88], sizes = [16, 8], strides = [1, 1]} : vector<16x96xf32> to vector<16x8xf32>
    %cst_100 = arith.constant dense<0.000000e+00> : vector<16x16xf32>
    %289 = tpu.matmul %286, %287, %cst_100 {dimension_numbers = #tpu.dot_dimension_numbers<[1], [1], [0], [0], [0, 0, 1, 0], [], []>} : vector<16x8xf32>, vector<16x8xf32>, vector<16x16xf32> -> vector<16x16xf32>
    %cst_101 = arith.constant 0.353553385 : f32
    %290 = vector.broadcast %cst_101 : f32 to vector<16x16xf32>
    %291 = arith.mulf %289, %290 : vector<16x16xf32>
    %292 = arith.addf %291, %62 : vector<16x16xf32>
    %cst_102 = arith.constant dense<0xFF800000> : vector<16xf32>
    %293 = vector.multi_reduction <maximumf>, %292, %cst_102 [1] : vector<16x16xf32> to vector<16xf32>
    %294 = vector.shape_cast %293 : vector<16xf32> to vector<16x1xf32>
    %295 = vector.broadcast %294 : vector<16x1xf32> to vector<16x16xf32>
    %296 = arith.subf %292, %295 : vector<16x16xf32>
    %297 = math.exp %296 : vector<16x16xf32>
    %cst_103 = arith.constant dense<0.000000e+00> : vector<16xf32>
    %298 = vector.multi_reduction <add>, %297, %cst_103 [1] : vector<16x16xf32> to vector<16xf32>
    %299 = vector.shape_cast %298 : vector<16xf32> to vector<16x1xf32>
    %300 = tpu.reciprocal %299 : vector<16x1xf32> -> vector<16x1xf32>
    %301 = vector.broadcast %300 : vector<16x1xf32> to vector<16x16xf32>
    %302 = arith.mulf %297, %301 : vector<16x16xf32>
    %cst_104 = arith.constant dense<0.000000e+00> : vector<16x8xf32>
    %303 = tpu.matmul %302, %288, %cst_104 {dimension_numbers = #tpu.dot_dimension_numbers<[1], [0], [0], [1], [0, 0, 1, 1], [], []>} : vector<16x16xf32>, vector<16x8xf32>, vector<16x8xf32> -> vector<16x8xf32>
    %304 = vector.extract_strided_slice %248 {offsets = [0, 0], sizes = [8, 8], strides = [1, 1]} : vector<16x16xf32> to vector<8x8xf32>
    %305 = vector.extract_strided_slice %266 {offsets = [0, 0], sizes = [8, 8], strides = [1, 1]} : vector<16x16xf32> to vector<8x8xf32>
    %306 = vector.extract_strided_slice %284 {offsets = [0, 0], sizes = [8, 8], strides = [1, 1]} : vector<16x16xf32> to vector<8x8xf32>
    %307 = vector.extract_strided_slice %302 {offsets = [0, 0], sizes = [8, 8], strides = [1, 1]} : vector<16x16xf32> to vector<8x8xf32>
    %308 = tpu.concatenate %304, %305, %306, %307 in 1 : vector<8x8xf32>, vector<8x8xf32>, vector<8x8xf32>, vector<8x8xf32> -> vector<8x32xf32>
    %c16 = arith.constant 16 : index
    %c0_105 = arith.constant 0 : index
    %309 = vector.load %arg6[%c16, %c0_105] : memref<32x32xf32, #tpu.memory_space<vmem>>, vector<8x32xf32>
    tpu.vector_store %arg6[%c16, %c0_105], %308 {strides = array<i32>} : memref<32x32xf32, #tpu.memory_space<vmem>>, vector<8x32xf32>,
    %310 = vector.extract_strided_slice %248 {offsets = [8, 8], sizes = [8, 8], strides = [1, 1]} : vector<16x16xf32> to vector<8x8xf32>
    %311 = vector.extract_strided_slice %266 {offsets = [8, 8], sizes = [8, 8], strides = [1, 1]} : vector<16x16xf32> to vector<8x8xf32>
    %312 = vector.extract_strided_slice %284 {offsets = [8, 8], sizes = [8, 8], strides = [1, 1]} : vector<16x16xf32> to vector<8x8xf32>
    %313 = vector.extract_strided_slice %302 {offsets = [8, 8], sizes = [8, 8], strides = [1, 1]} : vector<16x16xf32> to vector<8x8xf32>
    %314 = tpu.concatenate %310, %311, %312, %313 in 1 : vector<8x8xf32>, vector<8x8xf32>, vector<8x8xf32>, vector<8x8xf32> -> vector<8x32xf32>
    %c24 = arith.constant 24 : index
    %c0_106 = arith.constant 0 : index
    %315 = vector.load %arg6[%c24, %c0_106] : memref<32x32xf32, #tpu.memory_space<vmem>>, vector<8x32xf32>
    tpu.vector_store %arg6[%c24, %c0_106], %314 {strides = array<i32>} : memref<32x32xf32, #tpu.memory_space<vmem>>, vector<8x32xf32>,
    %316 = tpu.concatenate %249, %267, %285, %303 in 1 : vector<16x8xf32>, vector<16x8xf32>, vector<16x8xf32>, vector<16x8xf32> -> vector<16x32xf32>
    %c272 = arith.constant 272 : index
    %c0_107 = arith.constant 0 : index
    %317 = vector.load %arg3[%c272, %c0_107] : memref<528x128xf32, #tpu.memory_space<vmem>>, vector<32x32xf32>
    %cst_108 = arith.constant dense<0.000000e+00> : vector<16x32xf32>
    %318 = tpu.matmul %316, %317, %cst_108 {dimension_numbers = #tpu.dot_dimension_numbers<[1], [0], [0], [1], [0, 0, 1, 1], [], []>} : vector<16x32xf32>, vector<32x32xf32>, vector<16x32xf32> -> vector<16x32xf32>
    %c11 = arith.constant 11 : index
    %c0_109 = arith.constant 0 : index
    %319 = vector.load %arg4[%c11, %c0_109] : memref<24x128xf32, #tpu.memory_space<vmem>>, vector<1x32xf32>
    %320 = vector.broadcast %319 : vector<1x32xf32> to vector<16x32xf32>
    %321 = arith.addf %318, %320 : vector<16x32xf32>
    %322 = arith.addf %226, %321 : vector<16x32xf32>
    %c12 = arith.constant 12 : index
    %c0_110 = arith.constant 0 : index
    %323 = vector.load %arg4[%c12, %c0_110] : memref<24x128xf32, #tpu.memory_space<vmem>>, vector<1x32xf32>
    %c13 = arith.constant 13 : index
    %c0_111 = arith.constant 0 : index
    %324 = vector.load %arg4[%c13, %c0_111] : memref<24x128xf32, #tpu.memory_space<vmem>>, vector<1x32xf32>
    %cst_112 = arith.constant dense<0.000000e+00> : vector<16xf32>
    %325 = vector.multi_reduction <add>, %322, %cst_112 [1] : vector<16x32xf32> to vector<16xf32>
    %326 = vector.shape_cast %325 : vector<16xf32> to vector<16x1xf32>
    %cst_113 = arith.constant 3.200000e+01 : f32
    %327 = vector.broadcast %cst_113 : f32 to vector<16x1xf32>
    %328 = arith.divf %326, %327 : vector<16x1xf32>
    %329 = vector.broadcast %328 : vector<16x1xf32> to vector<16x32xf32>
    %330 = arith.subf %322, %329 : vector<16x32xf32>
    %331 = arith.mulf %330, %330 : vector<16x32xf32>
    %cst_114 = arith.constant dense<0.000000e+00> : vector<16xf32>
    %332 = vector.multi_reduction <add>, %331, %cst_114 [1] : vector<16x32xf32> to vector<16xf32>
    %333 = vector.shape_cast %332 : vector<16xf32> to vector<16x1xf32>
    %cst_115 = arith.constant 3.200000e+01 : f32
    %334 = vector.broadcast %cst_115 : f32 to vector<16x1xf32>
    %335 = arith.divf %333, %334 : vector<16x1xf32>
    %cst_116 = arith.constant 9.99999996E-13 : f32
    %336 = vector.broadcast %cst_116 : f32 to vector<16x1xf32>
    %337 = arith.addf %335, %336 : vector<16x1xf32>
    %338 = math.rsqrt %337 : vector<16x1xf32>
    %339 = vector.broadcast %338 : vector<16x1xf32> to vector<16x32xf32>
    %340 = arith.mulf %330, %339 : vector<16x32xf32>
    %341 = vector.broadcast %323 : vector<1x32xf32> to vector<16x32xf32>
    %342 = arith.mulf %340, %341 : vector<16x32xf32>
    %343 = vector.broadcast %324 : vector<1x32xf32> to vector<16x32xf32>
    %344 = arith.addf %342, %343 : vector<16x32xf32>
    %c304 = arith.constant 304 : index
    %c0_117 = arith.constant 0 : index
    %345 = vector.load %arg3[%c304, %c0_117] : memref<528x128xf32, #tpu.memory_space<vmem>>, vector<32x64xf32>
    %cst_118 = arith.constant dense<0.000000e+00> : vector<16x64xf32>
    %346 = tpu.matmul %344, %345, %cst_118 {dimension_numbers = #tpu.dot_dimension_numbers<[1], [0], [0], [1], [0, 0, 1, 1], [], []>} : vector<16x32xf32>, vector<32x64xf32>, vector<16x64xf32> -> vector<16x64xf32>
    %c14 = arith.constant 14 : index
    %c0_119 = arith.constant 0 : index
    %347 = vector.load %arg4[%c14, %c0_119] : memref<24x128xf32, #tpu.memory_space<vmem>>, vector<1x64xf32>
    %348 = vector.broadcast %347 : vector<1x64xf32> to vector<16x64xf32>
    %349 = arith.addf %346, %348 : vector<16x64xf32>
    %350 = arith.mulf %349, %349 : vector<16x64xf32>
    %351 = arith.mulf %349, %350 : vector<16x64xf32>
    %cst_120 = arith.constant 4.471500e-02 : f32
    %352 = vector.broadcast %cst_120 : f32 to vector<16x64xf32>
    %353 = arith.mulf %352, %351 : vector<16x64xf32>
    %354 = arith.addf %349, %353 : vector<16x64xf32>
    %cst_121 = arith.constant 0.797884583 : f32
    %355 = vector.broadcast %cst_121 : f32 to vector<16x64xf32>
    %356 = arith.mulf %355, %354 : vector<16x64xf32>
    %357 = math.tanh %356 : vector<16x64xf32>
    %cst_122 = arith.constant 1.000000e+00 : f32
    %358 = vector.broadcast %cst_122 : f32 to vector<16x64xf32>
    %359 = arith.addf %358, %357 : vector<16x64xf32>
    %cst_123 = arith.constant 5.000000e-01 : f32
    %360 = vector.broadcast %cst_123 : f32 to vector<16x64xf32>
    %361 = arith.mulf %360, %359 : vector<16x64xf32>
    %362 = arith.mulf %349, %361 : vector<16x64xf32>
    %c336 = arith.constant 336 : index
    %c0_124 = arith.constant 0 : index
    %363 = vector.load %arg3[%c336, %c0_124] : memref<528x128xf32, #tpu.memory_space<vmem>>, vector<64x32xf32>
    %cst_125 = arith.constant dense<0.000000e+00> : vector<16x32xf32>
    %364 = tpu.matmul %362, %363, %cst_125 {dimension_numbers = #tpu.dot_dimension_numbers<[1], [0], [0], [1], [0, 0, 1, 1], [], []>} : vector<16x64xf32>, vector<64x32xf32>, vector<16x32xf32> -> vector<16x32xf32>
    %c15 = arith.constant 15 : index
    %c0_126 = arith.constant 0 : index
    %365 = vector.load %arg4[%c15, %c0_126] : memref<24x128xf32, #tpu.memory_space<vmem>>, vector<1x32xf32>
    %366 = vector.broadcast %365 : vector<1x32xf32> to vector<16x32xf32>
    %367 = arith.addf %364, %366 : vector<16x32xf32>
    %368 = arith.addf %344, %367 : vector<16x32xf32>
    %c16_127 = arith.constant 16 : index
    %c0_128 = arith.constant 0 : index
    %369 = vector.load %arg4[%c16_127, %c0_128] : memref<24x128xf32, #tpu.memory_space<vmem>>, vector<1x32xf32>
    %c17 = arith.constant 17 : index
    %c0_129 = arith.constant 0 : index
    %370 = vector.load %arg4[%c17, %c0_129] : memref<24x128xf32, #tpu.memory_space<vmem>>, vector<1x32xf32>
    %cst_130 = arith.constant dense<0.000000e+00> : vector<16xf32>
    %371 = vector.multi_reduction <add>, %368, %cst_130 [1] : vector<16x32xf32> to vector<16xf32>
    %372 = vector.shape_cast %371 : vector<16xf32> to vector<16x1xf32>
    %cst_131 = arith.constant 3.200000e+01 : f32
    %373 = vector.broadcast %cst_131 : f32 to vector<16x1xf32>
    %374 = arith.divf %372, %373 : vector<16x1xf32>
    %375 = vector.broadcast %374 : vector<16x1xf32> to vector<16x32xf32>
    %376 = arith.subf %368, %375 : vector<16x32xf32>
    %377 = arith.mulf %376, %376 : vector<16x32xf32>
    %cst_132 = arith.constant dense<0.000000e+00> : vector<16xf32>
    %378 = vector.multi_reduction <add>, %377, %cst_132 [1] : vector<16x32xf32> to vector<16xf32>
    %379 = vector.shape_cast %378 : vector<16xf32> to vector<16x1xf32>
    %cst_133 = arith.constant 3.200000e+01 : f32
    %380 = vector.broadcast %cst_133 : f32 to vector<16x1xf32>
    %381 = arith.divf %379, %380 : vector<16x1xf32>
    %cst_134 = arith.constant 9.99999996E-13 : f32
    %382 = vector.broadcast %cst_134 : f32 to vector<16x1xf32>
    %383 = arith.addf %381, %382 : vector<16x1xf32>
    %384 = math.rsqrt %383 : vector<16x1xf32>
    %385 = vector.broadcast %384 : vector<16x1xf32> to vector<16x32xf32>
    %386 = arith.mulf %376, %385 : vector<16x32xf32>
    %387 = vector.broadcast %369 : vector<1x32xf32> to vector<16x32xf32>
    %388 = arith.mulf %386, %387 : vector<16x32xf32>
    %389 = vector.broadcast %370 : vector<1x32xf32> to vector<16x32xf32>
    %390 = arith.addf %388, %389 : vector<16x32xf32>
    %391 = vector.extract_strided_slice %390 {offsets = [0, 0], sizes = [1, 32], strides = [1, 1]} : vector<16x32xf32> to vector<1x32xf32>
    %392 = vector.extract_strided_slice %390 {offsets = [8, 0], sizes = [1, 32], strides = [1, 1]} : vector<16x32xf32> to vector<1x32xf32>
    %393 = tpu.concatenate %391, %392 in 0 : vector<1x32xf32>, vector<1x32xf32> -> vector<2x32xf32>
    %c400 = arith.constant 400 : index
    %c0_135 = arith.constant 0 : index
    %394 = vector.load %arg3[%c400, %c0_135] : memref<528x128xf32, #tpu.memory_space<vmem>>, vector<32x32xf32>
    %cst_136 = arith.constant dense<0.000000e+00> : vector<2x32xf32>
    %395 = tpu.matmul %393, %394, %cst_136 {dimension_numbers = #tpu.dot_dimension_numbers<[1], [0], [0], [1], [0, 0, 1, 1], [], []>} : vector<2x32xf32>, vector<32x32xf32>, vector<2x32xf32> -> vector<2x32xf32>
    %c18 = arith.constant 18 : index
    %c0_137 = arith.constant 0 : index
    %396 = vector.load %arg4[%c18, %c0_137] : memref<24x128xf32, #tpu.memory_space<vmem>>, vector<1x32xf32>
    %397 = vector.broadcast %396 : vector<1x32xf32> to vector<2x32xf32>
    %398 = arith.addf %395, %397 : vector<2x32xf32>
    %399 = math.tanh %398 : vector<2x32xf32>
    %c432 = arith.constant 432 : index
    %c0_138 = arith.constant 0 : index
    %400 = vector.load %arg3[%c432, %c0_138] : memref<528x128xf32, #tpu.memory_space<vmem>>, vector<32x64xf32>
    %cst_139 = arith.constant dense<0.000000e+00> : vector<2x64xf32>
    %401 = tpu.matmul %399, %400, %cst_139 {dimension_numbers = #tpu.dot_dimension_numbers<[1], [0], [0], [1], [0, 0, 1, 1], [], []>} : vector<2x32xf32>, vector<32x64xf32>, vector<2x64xf32> -> vector<2x64xf32>
    %c19 = arith.constant 19 : index
    %c0_140 = arith.constant 0 : index
    %402 = vector.load %arg4[%c19, %c0_140] : memref<24x128xf32, #tpu.memory_space<vmem>>, vector<1x64xf32>
    %403 = vector.broadcast %402 : vector<1x64xf32> to vector<2x64xf32>
    %404 = arith.addf %401, %403 : vector<2x64xf32>
    %cst_141 = arith.constant 0.000000e+00 : f32
    %405 = vector.broadcast %cst_141 : f32 to vector<2x64xf32>
    %406 = arith.maximumf %404, %405 : vector<2x64xf32>
    %c464 = arith.constant 464 : index
    %c0_142 = arith.constant 0 : index
    %407 = vector.load %arg3[%c464, %c0_142] : memref<528x128xf32, #tpu.memory_space<vmem>>, vector<64x10xf32>
    %cst_143 = arith.constant dense<0.000000e+00> : vector<2x10xf32>
    %408 = tpu.matmul %406, %407, %cst_143 {dimension_numbers = #tpu.dot_dimension_numbers<[1], [0], [0], [1], [0, 0, 1, 1], [], []>} : vector<2x64xf32>, vector<64x10xf32>, vector<2x10xf32> -> vector<2x10xf32>
    %c20 = arith.constant 20 : index
    %c0_144 = arith.constant 0 : index
    %409 = vector.load %arg4[%c20, %c0_144] : memref<24x128xf32, #tpu.memory_space<vmem>>, vector<1x10xf32>
    %410 = vector.broadcast %409 : vector<1x10xf32> to vector<2x10xf32>
    %411 = arith.addf %408, %410 : vector<2x10xf32>
    %c0_145 = arith.constant 0 : index
    %c0_146 = arith.constant 0 : index
    %412 = vector.load %arg5[%c0_145, %c0_146] : memref<2x10xf32, #tpu.memory_space<vmem>>, vector<2x10xf32>
    tpu.vector_store %arg5[%c0_145, %c0_146], %411 {strides = array<i32>} : memref<2x10xf32, #tpu.memory_space<vmem>>, vector<2x10xf32>,
    return
  }
  func.func @transform_0(%arg0: i32) -> (i32, i32) {
    %c0_i32 = arith.constant 0 : i32
    %c0_i32_0 = arith.constant 0 : i32
    %c0_i32_1 = arith.constant 0 : i32
    return %c0_i32, %c0_i32_0 : i32, i32
  }
  func.func @transform_1(%arg0: i32) -> (i32, i32) {
    %c0_i32 = arith.constant 0 : i32
    %c0_i32_0 = arith.constant 0 : i32
    %c0_i32_1 = arith.constant 0 : i32
    return %c0_i32, %c0_i32_0 : i32, i32
  }
  func.func @transform_2(%arg0: i32) -> (i32, i32) {
    %c0_i32 = arith.constant 0 : i32
    %c0_i32_0 = arith.constant 0 : i32
    %c0_i32_1 = arith.constant 0 : i32
    return %c0_i32, %c0_i32_0 : i32, i32
  }
  func.func @transform_3(%arg0: i32) -> (i32, i32) {
    %c0_i32 = arith.constant 0 : i32
    %c0_i32_0 = arith.constant 0 : i32
    %c0_i32_1 = arith.constant 0 : i32
    return %c0_i32, %c0_i32_0 : i32, i32
  }
  func.func @transform_4(%arg0: i32) -> (i32, i32) {
    %c0_i32 = arith.constant 0 : i32
    %c0_i32_0 = arith.constant 0 : i32
    %c0_i32_1 = arith.constant 0 : i32
    return %c0_i32, %c0_i32_0 : i32, i32
  }
  func.func @transform_5(%arg0: i32) -> (i32, i32) {
    %c0_i32 = arith.constant 0 : i32
    %c0_i32_0 = arith.constant 0 : i32
    %c0_i32_1 = arith.constant 0 : i32
    return %c0_i32, %c0_i32_0 : i32, i32
  }
}

</mosaic_0001>

<bundles_post_ra>
// kernel: bert_vqa_forward.1
= control target key start
LH: loop header
LB: loop body
LE: loop exit
PB: predicated region body
PF: predicated region fallthrough
CT: control target
= control target key end

     0   :  { %11 = vsyncpa [#allocation3], 0  ;;  %s4731_s0 = inlined_call_operand.vmem [shape: s32[16,3], index: 0, kind: input, shape index: {}]   ;;  %s4732_s1 = inlined_call_operand.vmem [shape: s32[2,16], index: 1, kind: input, shape index: {}]   ;;  %s4733_s2 = inlined_call_operand.hbm [shape: f32[528,128], index: 2, kind: input, shape index: {}]   ;;  %s4734_s3 = inlined_call_operand.vmem [shape: f32[24,128], index: 3, kind: input, shape index: {}]   ;;  %s4735_s4 = inlined_call_operand.hbm [shape: f32[2,10], index: 4, kind: output, shape index: {0}]   ;;  %s4736_s5 = inlined_call_operand.vmem [shape: f32[32,32], index: 5, kind: output, shape index: {1}]  }
   0x1   :  { %12 = vsyncpa [#allocation4], 0  ;;  %s4146_s18 = smov [#allocation2]   ;;  %s4098_s22 = scalar_lea.hbm %s4733_s2, 8448 }
   0x2   :  { %s22_s19 = sshll.u32 %s4146_s18, 4  ;;  %p4099_p0 = scmp.ne.s32.totalorder %s4733_s2, %s4098_s22  ;;  %s23_s19 = int_to_ptr.vmem [resolvable:$true] %s22_s19 }
   0x3   :  { %p4102_p1 = scmp.lt.u32.totalorder %s4098_s22, %s4733_s2 }
   0x5   :  { %p4104_p2 = pnand %p4102_p1, %p4099_p0 }
   0x7   :  { %4107 = shalt.err (!%p4104_p2)
}
   0x8   :  { %s4108_s27 = scalar_lea.vmem %s23_s19, 8448  ;;  %p4113_p4 = scmp.lt.s32.totalorder %s23_s19, %s23_s19 }
   0x9   :  { %p4109_p3 = scmp.ne.s32.totalorder %s23_s19, %s4108_s27  ;;  %p4114_p5 = scmp.lt.s32.totalorder %s4108_s27, %s4108_s27 }
   0xb   :  { %p4115_p6 = por %p4114_p5, %p4113_p4 }
   0xd   :  { %p4116_p7 = pnand %p4115_p6, %p4109_p3 }
   0xf   :  { %4119 = shalt.err (!%p4116_p7)
}
  0x10   :  { %s4147_s28 = smov 128   ;;  %s4148_s29 = smov 8  }
  0x11   :  { %28 = dma.hbm_to_vmem [thread:$0]  %s4733_s2, 8448, %s23_s19, [#allocation3], %s4147_s28, %s4147_s28, %s4148_s29  }
  0x12   :  { %4142 = dma.done.wait [#allocation3], 8448  }
  0x13   :  { %4143 = vsyncadd [#allocation3], 4294958848  ;;  %v4149_v0 = vmov 0   ;;  %v4216_v1 = vld [vmem:[%s4731_s0] sm:$0xff]  ;;  %v49_v3 = vld [vmem:[#allocation2 + $0x8] sm:$0xff]  ;;  %v4150_v12 = vmov 1   ;;  %v36_v16 = vlaneseq }
  0x14   :  { %3920 = vset.pattern.permute.xlu0 %v4149_v0  ;;  %v48_v2 = vld [vmem:[#allocation2] sm:$0xff]  ;;  %v50_v4 = vld [vmem:[#allocation2 + $0x10] sm:$0xff]  ;;  %v51_v5 = vld [vmem:[#allocation2 + $0x18] sm:$0xff]  ;;  %vm55_vm0 = vcmp.eq.s32.totalorder %v4216_v1, 0  ;;  %3921 = vset.pattern.permute.xlu1 %v4150_v12  ;;  %vm80_vm2 = vcmask 457728   ;;  %v4151_v19 = vmov 0.0  }
  0x15   :  { %39 = vperm.xlu0 %3920, %v4216_v1   ;;  %v4222_v6 = vld [vmem:[%s4731_s0 + $0x8] sm:$0xff]  ;;  %v3700_v7 = vpack.c.bf16 %v49_v3, %v48_v2  ;;  %v3704_v8 = vpack.c.bf16 %v51_v5, %v50_v4  ;;  %v52_v9 = vld [vmem:[#allocation2 + $0x20] sm:$0xff]  ;;  %v59_v13 = vsel %vm55_vm0, 1, %v4149_v0  ;;  %v54_v15 = vld [vmem:[#allocation2 + $0x30] sm:$0xff]  ;;  %v37_v17 = vand.u32 127, %v36_v16  ;;  %s4152_s15 = smov 88  }
  0x16   :  { %v53_v10 = vld [vmem:[#allocation2 + $0x28] sm:$0xff]  ;;  %vm56_vm1 = vcmp.eq.s32.totalorder %v4222_v6, 0  ;;  %62 = vperm.xlu1 %3921, %v59_v13   ;;  %v79_v30 = vld [vmem:[#allocation2 + $0x38] sm:$0xff]  ;;  %vm166_vm7 = vcmask 261120   ;;  %v231_v48 = vld [vmem:[#allocation2 + $0x50] sm:$0xff]  ;;  %vm327_vm8 = vcmask 64512  }
  0x17   :  { %3701 = vmatprep.subr.bf16.mxu0 %v3700_v7  ;;  %v3708_v11 = vpack.c.bf16 %v53_v10, %v52_v9  ;;  %v60_v14 = vsel %vm56_vm1, 1, %v4149_v0  ;;  %v3185_v25 = vld [vmem:[#allocation2 + $0x48] ss:$0 sm:$0xff]  ;;  %v3186_v26 = vld [vmem:[#allocation2 + $0x49] ss:$0 sm:$0xff]  ;;  %v232_v49 = vld [vmem:[#allocation2 + $0x58] sm:$0xff] }
  0x18   :  { %3703 = vmatpush3.bf16.msra.mxu0 %v3700_v7  ;;  %v233_v50 = vld [vmem:[#allocation2 + $0x60] sm:$0xff]  ;;  %v3712_v51 = vpack.c.bf16 %v232_v49, %v231_v48  ;;  %v234_v52 = vld [vmem:[#allocation2 + $0x68] sm:$0xff]  ;;  %s4153_s16 = smov 96   ;;  %s4154_s17 = smov 120   ;;  %vm4279_vm9 = vmpackc.low %vm327_vm8, %vm327_vm8  ;;  %vm415_vm12 = vcmask 130048   ;;  %vm1148_vm13 = vcmask 195584  }
  0x19   :  { %42 = vperm.xlu0 %3920, %v4222_v6   ;;  %3705 = vmatprep.subr.bf16.mxu0 %v3704_v8  ;;  %v3716_v53 = vpack.c.bf16 %v234_v52, %v233_v50  ;;  %v3189_v61 = vld [vmem:[%s4734_s3] ss:$0 sm:$0xff]  ;;  %v3190_v63 = vld [vmem:[%s4734_s3 + $0x1] ss:$0 sm:$0xff]  ;;  %s4155_s18 = smov 80   ;;  %s4156_s19 = smov 112  }
  0x1a   :  { %65 = vperm.xlu1 %3921, %v60_v14   ;;  %3713 = vmatprep.subr.bf16.mxu1 %v3712_v51  ;;  %v4157_v14 = vmov 2   ;;  %s4160_s24 = smov 104   ;;  %s4161_s25 = smov 72   ;;  %vm1447_vm14 = vcmask 523264   ;;  %vm4168_vm15 = vmmov 0   ;;  %vm2910_vm0 = vcmask 1040384  }
  0x1b   :  { %3715 = vmatpush3.bf16.msra.mxu1 %v3712_v51  ;;  %s4162_s26 = smov 64   ;;  %s4163_s27 = smov 40   ;;  %vm3164_vm1 = vcmask 74752  }
  0x1c   :  { %3707 = vmatpush3.bf16.msra.mxu0 %v3704_v8  ;;  %3717 = vmatprep.subr.bf16.mxu1 %v3716_v53  ;;  %v3192_v8 = vld [vmem:[%s4734_s3 + $0x2] ss:$0 sm:$0xff]  ;;  %s4164_s28 = smov 56   ;;  %s4165_s30 = smov 16  }
  0x1d   :  { %3709 = vmatprep.subr.bf16.mxu0 %v3708_v11  ;;  %3938 = vset.pattern.permute.xlu0 %v4157_v14  ;;  %s4166_s6 = smov 24   ;;  %s4169_s8 = smov [#allocation5]  }
  0x1e   :  { %3937 = vset.pattern.permute.xlu1 %v4157_v14 }
  0x1f   :  { %3719 = vmatpush3.bf16.msra.mxu1 %v3716_v53 }
  0x20   :  { %3711 = vmatpush3.bf16.msra.mxu0 %v3708_v11 }
  0x21   :  { %3438 = vmatprep.subr.mxu0 %v54_v15 }
  0x24   :  { %3439 = vmatpush3.msra.mxu0 %v54_v15 }
  0x94   :  { %v40_v18 = vpop.permute.xlu0 %39 }
  0x95   :  { %vm44_vm3 = vcmp.eq.s32.totalorder %v40_v18, %v37_v17  ;;  %v63_v23 = vpop.permute.xlu1 %62 }
  0x96   :  { %v46_v20 = vsel %vm44_vm3, 1.0, %v4151_v19  ;;  %vm67_vm6 = vcmp.eq.s32.totalorder %v63_v23, 1 }
  0x97   :  { %3440 = vmatprep.mubr.msk.f32.mxu0 %vm80_vm2, %v46_v20  ;;  %v77_v28 = vsel %vm67_vm6, %v3185_v25, %v3186_v26 }
  0x98   :  { %v43_v21 = vpop.permute.xlu0 %42 }
  0x99   :  { %vm45_vm4 = vcmp.eq.s32.totalorder %v43_v21, %v37_v17  ;;  %v66_v24 = vpop.permute.xlu1 %65 }
  0x9a   :  { %v47_v22 = vsel %vm45_vm4, 1.0, %v4151_v19  ;;  %vm68_vm5 = vcmp.eq.s32.totalorder %v66_v24, 1 }
  0x9b   :  { %3441 = vmatmul.mubr.msk.f32.vlgmr.msra.gmra.mrb[0].mxu0 %vm80_vm2, %v47_v22  ;;  %v78_v27 = vsel %vm68_vm5, %v3185_v25, %v3186_v26 }
 0x16e   :  { %v3442_v29 = vpop.f32.mrb[0].mxu0 }
 0x16f   :  { %v159_v31 = vadd.f32 %v3442_v29, %v78_v27  ;;  %v153_v32 = vpop.f32.mrb[1].mxu0 }
 0x170   :  { %v154_v33 = vadd.f32 %v153_v32, %v77_v28  ;;  %v206_v32 = vld [vmem:[%s4732_s1] sm:$0x1] }
 0x171   :  { %v163_v34 = vadd.f32 %v159_v31, %v79_v30 }
 0x172   :  { %v162_v35 = vadd.f32 %v154_v33, %v79_v30 }
 0x173   :  { %v170_v36 = vsel %vm166_vm7, %v163_v34, 0.0 }
 0x174   :  { %171 = vadd.xlane.f32.xlu1 %v170_v36  ;;  %v167_v37 = vsel %vm166_vm7, %v162_v35, 0.0 }
 0x175   :  { %168 = vadd.xlane.f32.xlu0 %v167_v37  ;;  %v226_v37 = vshrl.u32 %v36_v16, 7 }
 0x201   :  { %v172_v38 = vpop.xlane.xlu1 %171 }
 0x202   :  { %v175_v39 = vmul.f32 0.03125, %v172_v38  ;;  %v169_v40 = vpop.xlane.xlu0 %168  ;;  %v3191_v38 = vld [vmem:[%s4732_s1 + $0x1] ss:$0 sm:$0xff]  ;;  %s4159_s1 = smov 48  }
 0x203   :  { %v174_v41 = vmul.f32 0.03125, %v169_v40 }
 0x204   :  { %v177_v42 = vsub.f32 %v163_v34, %v175_v39  ;;  %v207_v34 = vcvt.s32.f32 %v206_v32 }
 0x205   :  { %v176_v43 = vsub.f32 %v162_v35, %v174_v41 }
 0x206   :  { %v179_v46 = vmul.f32 %v177_v42, %v177_v42  ;;  %v223_v36 = vsub.f32 1.0, %v207_v34 }
 0x207   :  { %v178_v44 = vmul.f32 %v176_v43, %v176_v43 }
 0x208   :  { %v183_v47 = vsel %vm166_vm7, %v179_v46, 0.0  ;;  %v224_v41 = vmul.f32 -10000.0, %v223_v36  ;;  %v4158_v46 = vmov -10000.0  }
 0x209   :  { %v180_v45 = vsel %vm166_vm7, %v178_v44, 0.0 }
 0x20a   :  { %181 = vadd.xlane.f32.xlu0 %v180_v45 }
 0x20e   :  { %184 = vadd.xlane.f32.xlu0 %v183_v47 }
 0x297   :  { %v182_v54 = vpop.xlane.xlu0 %181 }
 0x298   :  { %v186_v55 = vmul.f32 0.03125, %v182_v54 }
 0x29a   :  { %v188_v56 = vadd.f32 1e-12, %v186_v55 }
 0x29b   :  { %v185_v57 = vpop.xlane.xlu0 %184 }
 0x29c   :  { %4004 = vrsqrt.f32 %v188_v56  ;;  %v187_v58 = vmul.f32 0.03125, %v185_v57 }
 0x29e   :  { %v189_v59 = vadd.f32 1e-12, %v187_v58 }
 0x2a0   :  { %4006 = vrsqrt.f32 %v189_v59 }
 0x2a6   :  { %v4005_v60 = vpop.eup %4004 }
 0x2a7   :  { %v192_v62 = vmul.f32 %v4005_v60, %v176_v43 }
 0x2a9   :  { %v198_v0 = vmul.f32 %v3189_v61, %v192_v62 }
 0x2aa   :  { %v4007_v2 = vpop.eup %4006 }
 0x2ab   :  { %v193_v3 = vmul.f32 %v4007_v2, %v177_v42  ;;  %v4240_v4 = vadd.f32 %v3190_v63, %v198_v0  ;;  %v227_v42 = vsub.s32 0, %v226_v37 }
 0x2ad   :  { %v199_v5 = vmul.f32 %v3189_v61, %v193_v3  ;;  %3451 = vmatprep.mubr.msk.f32.mxu1 %vm166_vm7, %v4240_v4  ;;  %v228_v45 = vrot.slane %v224_v41, %v227_v42 }
 0x2af   :  { %v4244_v7 = vadd.f32 %v3190_v63, %v199_v5 }
 0x2b1   :  { %3452 = vmatmul.mubr.msk.f32.vlgmr.msra.gmra.mrb[0].mxu1 %vm166_vm7, %v4244_v7 }
 0x384   :  { %v3453_v9 = vpop.f32.mrb[0].mxu1 }
 0x385   :  { %v4251_v10 = vadd.f32 %v3453_v9, %v3192_v8  ;;  %v312_v11 = vpop.f32.mrb[1].mxu1 }
 0x386   :  { %v4253_v12 = vadd.f32 %v3192_v8, %v312_v11 }
 0x388   :  { %3458 = vmatprep.mubr.msk.f32.mxu1 %vm327_vm8, %v4253_v12  ;;  %v4259_v13 = vpack.i.bf16 %v4251_v10, %v4253_v12 }
 0x38a   :  { %3928 = vrot.lane.b32.xlu0 %v4259_v13, %s4152_s15  ;;  %3923 = vrot.lane.b32.xlu1 %v4259_v13, %s4153_s16 }
 0x38e   :  { %527 = vrot.lane.b32.xlu0 %v4251_v10, %s4154_s17  ;;  %3933 = vrot.lane.b32.xlu1 %v4259_v13, %s4155_s18 }
 0x392   :  { %731 = vrot.lane.b32.xlu0 %v4251_v10, %s4156_s19  ;;  %525 = vrot.lane.b32.xlu1 %v4253_v12, %s4154_s17 }
 0x396   :  { %729 = vrot.lane.b32.xlu1 %v4253_v12, %s4156_s19  ;;  %213 = vperm.xlu0 %3938, %v4222_v6  }
 0x39a   :  { %210 = vperm.xlu1 %3937, %v4216_v1  }
 0x3fc   :  { %v3929_v15 = vpop.permute.xlu0 %3928  ;;  %v3924_v17 = vpop.permute.xlu1 %3923 }
 0x3fd   :  { %v3931_v18 = vunpack.i.h.bf16 %v3929_v15  ;;  %v3930_v20 = vunpack.i.l.bf16 %v3929_v15  ;;  %v3926_v21 = vunpack.i.h.bf16 %v3924_v17  ;;  %v3925_v22 = vunpack.i.l.bf16 %v3924_v17 }
 0x3ff   :  { %v3720_v24 = vpack.c.bf16 %v3926_v21, %v3925_v22  ;;  %v3730_v25 = vpack.c.bf16 %v3931_v18, %v3930_v20 }
 0x400   :  { %v3934_v6 = vpop.permute.xlu1 %3933  ;;  %v528_v29 = vpop.permute.xlu0 %527 }
 0x401   :  { %3722 = vmatprep.subr.msk.bf16.mxu1 %vm4279_vm9, %v3720_v24  ;;  %v3936_v1 = vunpack.i.h.bf16 %v3934_v6  ;;  %v3935_v26 = vunpack.i.l.bf16 %v3934_v6 }
 0x402   :  { %3725 = vmatpush3.bf16.xpose.msk.msra.mxu1 %vm4279_vm9, %v3720_v24 }
 0x403   :  { %3732 = vmatprep.subr.msk.bf16.mxu1 %vm4279_vm9, %v3730_v25  ;;  %v3740_v27 = vpack.c.bf16 %v3936_v1, %v3935_v26 }
 0x404   :  { %v526_v28 = vpop.permute.xlu1 %525  ;;  %v732_v31 = vpop.permute.xlu0 %731 }
 0x408   :  { %v730_v30 = vpop.permute.xlu1 %729 }
 0x409   :  { %3459 = vmatmul.mubr.msk.f32.vlgmr.msra.gmra.mrb[2].mxu1 %vm327_vm8, %v4251_v10 }
 0x40a   :  { %3735 = vmatpush3.bf16.xpose.msk.msra.mxu1 %vm4279_vm9, %v3730_v25  ;;  %3472 = vmatprep.mubr.msk.f32.mxu1 %vm327_vm8, %v526_v28 }
 0x40b   :  { %3742 = vmatprep.subr.msk.bf16.mxu1 %vm4279_vm9, %v3740_v27 }
 0x411   :  { %3473 = vmatmul.mubr.msk.f32.vlgmr.msra.gmra.mrb[4].mxu1 %vm327_vm8, %v528_v29 }
 0x412   :  { %3745 = vmatpush3.bf16.xpose.msk.msra.mxu1 %vm4279_vm9, %v3740_v27  ;;  %3486 = vmatprep.mubr.msk.f32.mxu1 %vm327_vm8, %v730_v30 }
 0x415   :  { %v214_v39 = vpop.permute.xlu0 %213 }
 0x416   :  { %vm220_vm10 = vcmp.eq.s32.totalorder %v214_v39, %v3191_v38 }
 0x417   :  { %v222_v47 = vsel %vm220_vm10, 0.0, %v4158_v46 }
 0x418   :  { %v4308_v50 = vadd.f32 %v228_v45, %v222_v47 }
 0x419   :  { %3487 = vmatmul.mubr.msk.f32.vlgmr.msra.gmra.mrb[6].mxu1 %vm327_vm8, %v732_v31  ;;  %v211_v43 = vpop.permute.xlu1 %210 }
 0x41a   :  { %vm219_vm11 = vcmp.eq.s32.totalorder %v211_v43, %v3191_v38 }
 0x41b   :  { %v221_v48 = vsel %vm219_vm11, 0.0, %v4158_v46 }
 0x41c   :  { %v4310_v52 = vadd.f32 %v228_v45, %v221_v48 }
 0x4dc   :  { %v3460_v33 = vpop.f32.mrb[2].mxu1 }
 0x4dd   :  { %v402_v35 = vpop.f32.mrb[3].mxu1  ;;  %v412_v15 = vmul.f32 0.35355338, %v3460_v33 }
 0x4de   :  { %v411_v14 = vmul.f32 0.35355338, %v402_v35 }
 0x4df   :  { %v414_v20 = vadd.f32 %v412_v15, %v4308_v50 }
 0x4e0   :  { %v413_v18 = vadd.f32 %v411_v14, %v4310_v52 }
 0x4e1   :  { %v419_v25 = vsel %vm415_vm12, %v414_v20, -inf }
 0x4e2   :  { %v416_v22 = vsel %vm415_vm12, %v413_v18, -inf }
 0x4e4   :  { %v3474_v40 = vpop.f32.mrb[4].mxu1 }
 0x4e5   :  { %v607_v44 = vpop.f32.mrb[5].mxu1  ;;  %v617_v21 = vmul.f32 0.35355338, %v3474_v40 }
 0x4e6   :  { %v616_v17 = vmul.f32 0.35355338, %v607_v44 }
 0x4e7   :  { %v619_v6 = vadd.f32 %v617_v21, %v4308_v50 }
 0x4e8   :  { %v618_v24 = vadd.f32 %v616_v17, %v4310_v52 }
 0x4e9   :  { %v623_v1 = vsel %vm415_vm12, %v619_v6, -inf }
 0x4ec   :  { %v3488_v49 = vpop.f32.mrb[6].mxu1 }
 0x4ed   :  { %v821_v16 = vmul.f32 0.35355338, %v3488_v49  ;;  %v811_v51 = vpop.f32.mrb[7].mxu1 }
 0x4ee   :  { %v820_v53 = vmul.f32 0.35355338, %v811_v51 }
 0x4ef   :  { %v823_v54 = vadd.f32 %v821_v16, %v4308_v50 }
 0x4f0   :  { %v822_v55 = vadd.f32 %v820_v53, %v4310_v52 }
 0x4f1   :  { %v827_v56 = vsel %vm415_vm12, %v823_v54, -inf }
 0x4f2   :  { %828 = vmax.xlane.f32.xlu0 %v827_v56  ;;  %v824_v57 = vsel %vm415_vm12, %v822_v55, -inf }
 0x4f3   :  { %825 = vmax.xlane.f32.xlu1 %v824_v57 }
 0x504   :  { %3940 = vrot.lane.b32.xlu1 %v4259_v13, %s4159_s1 }
 0x508   :  { %933 = vrot.lane.b32.xlu1 %v4253_v12, %s4160_s24 }
 0x57f   :  { %v829_v58 = vpop.xlane.xlu0 %828 }
 0x580   :  { %v831_v59 = vsub.f32 %v823_v54, %v829_v58  ;;  %v826_v60 = vpop.xlane.xlu1 %825 }
 0x581   :  { %v830_v61 = vsub.f32 %v822_v55, %v826_v60 }
 0x582   :  { %v834_v62 = vmul.f32 1.442695, %v831_v59 }
 0x583   :  { %v832_v63 = vmul.f32 1.442695, %v830_v61 }
 0x584   :  { %4008 = vpow2.f32 %v834_v62  ;;  %v3941_v0 = vpop.permute.xlu1 %3940 }
 0x585   :  { %4010 = vpow2.f32 %v832_v63  ;;  %v3943_v2 = vunpack.i.h.bf16 %v3941_v0  ;;  %v3942_v3 = vunpack.i.l.bf16 %v3941_v0 }
 0x587   :  { %v3746_v5 = vpack.c.bf16 %v3943_v2, %v3942_v3 }
 0x588   :  { %v934_v26 = vpop.permute.xlu1 %933 }
 0x589   :  { %3747 = vmatprep.subr.bf16.mxu1 %v3746_v5 }
 0x58a   :  { %3749 = vmatpush3.bf16.msra.mxu1 %v3746_v5 }
 0x58e   :  { %v4009_v8 = vpop.eup %4008 }
 0x58f   :  { %v4011_v9 = vpop.eup %4010  ;;  %v839_v11 = vsel %vm415_vm12, %v4009_v8, 0.0 }
 0x590   :  { %840 = vadd.xlane.f32.xlu0 %v839_v11  ;;  %v836_v12 = vsel %vm415_vm12, %v4011_v9, 0.0 }
 0x591   :  { %837 = vadd.xlane.f32.xlu1 %v836_v12 }
 0x5a2   :  { %935 = vrot.lane.b32.xlu1 %v4251_v10, %s4160_s24  ;;  %v620_v10 = vsel %vm415_vm12, %v618_v24, -inf }
 0x5a6   :  { %3945 = vrot.lane.b32.xlu0 %v4259_v13, %s4161_s25 }
 0x5c5   :  { %417 = vmax.xlane.f32.xlu0 %v416_v22 }
 0x5c6   :  { %420 = vmax.xlane.f32.xlu1 %v419_v25 }
 0x5c9   :  { %621 = vmax.xlane.f32.xlu0 %v620_v10 }
 0x5cd   :  { %624 = vmax.xlane.f32.xlu0 %v623_v1 }
 0x61d   :  { %v841_v27 = vpop.xlane.xlu0 %840 }
 0x61e   :  { %4012 = vrcp.f32 %v841_v27  ;;  %v838_v28 = vpop.xlane.xlu1 %837 }
 0x61f   :  { %4014 = vrcp.f32 %v838_v28 }
 0x621   :  { %v3946_v29 = vpop.permute.xlu0 %3945 }
 0x622   :  { %v3948_v30 = vunpack.i.h.bf16 %v3946_v29  ;;  %v3947_v31 = vunpack.i.l.bf16 %v3946_v29  ;;  %v936_v37 = vpop.permute.xlu1 %935 }
 0x624   :  { %v3750_v32 = vpack.c.bf16 %v3948_v30, %v3947_v31 }
 0x626   :  { %3752 = vmatprep.subr.msk.bf16.mxu1 %vm4279_vm9, %v3750_v32 }
 0x628   :  { %v4013_v33 = vpop.eup %4012 }
 0x629   :  { %v4015_v34 = vpop.eup %4014  ;;  %v4338_v36 = vmul.f32 %v4013_v33, %v4009_v8 }
 0x62a   :  { %v4336_v35 = vmul.f32 %v4015_v34, %v4011_v9 }
 0x62c   :  { %3493 = vmatprep.mubr.msk.f32.mxu1 %vm415_vm12, %v4336_v35 }
 0x62d   :  { %3494 = vmatmul.mubr.msk.f32.vlgmr.msra.gmra.mrb[8].mxu1 %vm415_vm12, %v4338_v36 }
 0x62e   :  { %3755 = vmatpush3.bf16.xpose.msk.msra.mxu1 %vm4279_vm9, %v3750_v32  ;;  %3500 = vmatprep.mubr.msk.f32.mxu1 %vm327_vm8, %v934_v26 }
 0x635   :  { %3501 = vmatmul.mubr.msk.f32.vlgmr.msra.gmra.mrb[10].mxu1 %vm327_vm8, %v936_v37 }
 0x652   :  { %v418_v38 = vpop.xlane.xlu0 %417 }
 0x653   :  { %v421_v40 = vpop.xlane.xlu1 %420  ;;  %v422_v42 = vsub.f32 %v413_v18, %v418_v38 }
 0x654   :  { %v423_v41 = vsub.f32 %v414_v20, %v421_v40 }
 0x655   :  { %v424_v47 = vmul.f32 1.442695, %v422_v42 }
 0x656   :  { %v622_v39 = vpop.xlane.xlu0 %621  ;;  %v426_v44 = vmul.f32 1.442695, %v423_v41 }
 0x657   :  { %v626_v48 = vsub.f32 %v618_v24, %v622_v39 }
 0x658   :  { %4016 = vpow2.f32 %v426_v44 }
 0x659   :  { %4018 = vpow2.f32 %v424_v47  ;;  %v628_v51 = vmul.f32 1.442695, %v626_v48 }
 0x65a   :  { %v625_v43 = vpop.xlane.xlu0 %624 }
 0x65b   :  { %v627_v45 = vsub.f32 %v619_v6, %v625_v43 }
 0x65d   :  { %v630_v16 = vmul.f32 1.442695, %v627_v45 }
 0x65f   :  { %4020 = vpow2.f32 %v630_v16 }
 0x660   :  { %4022 = vpow2.f32 %v628_v51 }
 0x662   :  { %v4017_v60 = vpop.eup %4016 }
 0x663   :  { %v4019_v62 = vpop.eup %4018  ;;  %v431_v63 = vsel %vm415_vm12, %v4017_v60, 0.0 }
 0x664   :  { %v428_v2 = vsel %vm415_vm12, %v4019_v62, 0.0 }
 0x669   :  { %v4357_v0 = vpop.eup %4020 }
 0x66a   :  { %v4023_v3 = vpop.eup %4022  ;;  %v635_v5 = vsel %vm415_vm12, %v4357_v0, 0.0 }
 0x66b   :  { %v632_v8 = vsel %vm415_vm12, %v4023_v3, 0.0 }
 0x700   :  { %v4348_v46 = vpop.f32.mrb[8].mxu1 }
 0x701   :  { %v4350_v49 = vpop.f32.mrb[9].mxu1 }
 0x708   :  { %v3502_v53 = vpop.f32.mrb[10].mxu1 }
 0x709   :  { %v1025_v54 = vmul.f32 0.35355338, %v3502_v53  ;;  %v1015_v55 = vpop.f32.mrb[11].mxu1 }
 0x70a   :  { %v1024_v56 = vmul.f32 0.35355338, %v1015_v55 }
 0x70b   :  { %v1027_v57 = vadd.f32 %v1025_v54, %v4308_v50 }
 0x70c   :  { %v1026_v58 = vadd.f32 %v1024_v56, %v4310_v52 }
 0x70d   :  { %v1031_v59 = vsel %vm415_vm12, %v1027_v57, -inf }
 0x70e   :  { %1032 = vmax.xlane.f32.xlu0 %v1031_v59  ;;  %v1028_v61 = vsel %vm415_vm12, %v1026_v58, -inf }
 0x70f   :  { %1029 = vmax.xlane.f32.xlu1 %v1028_v61  ;;  %v1197_v61 = vld [vmem:[#allocation2 + $0x88] sm:$0xff] }
 0x712   :  { %432 = vadd.xlane.f32.xlu0 %v431_v63 }
 0x713   :  { %429 = vadd.xlane.f32.xlu1 %v428_v2 }
 0x716   :  { %636 = vadd.xlane.f32.xlu0 %v635_v5 }
 0x717   :  { %633 = vadd.xlane.f32.xlu1 %v632_v8 }
 0x728   :  { %3950 = vrot.lane.b32.xlu1 %v4259_v13, %s4162_s26 }
 0x79b   :  { %v1033_v9 = vpop.xlane.xlu0 %1032 }
 0x79c   :  { %v1035_v11 = vsub.f32 %v1027_v57, %v1033_v9  ;;  %v1030_v12 = vpop.xlane.xlu1 %1029  ;;  %v1194_v57 = vld [vmem:[#allocation2 + $0x70] sm:$0xff] }
 0x79d   :  { %v1034_v14 = vsub.f32 %v1026_v58, %v1030_v12  ;;  %v1195_v58 = vld [vmem:[#allocation2 + $0x78] sm:$0xff] }
 0x79e   :  { %v1038_v15 = vmul.f32 1.442695, %v1035_v11  ;;  %v3760_v59 = vpack.c.bf16 %v1195_v58, %v1194_v57 }
 0x79f   :  { %v1036_v17 = vmul.f32 1.442695, %v1034_v14  ;;  %v433_v18 = vpop.xlane.xlu0 %432 }
 0x7a0   :  { %4024 = vpow2.f32 %v1038_v15  ;;  %v430_v20 = vpop.xlane.xlu1 %429 }
 0x7a1   :  { %4026 = vpow2.f32 %v1036_v17 }
 0x7a2   :  { %4028 = vrcp.f32 %v433_v18 }
 0x7a3   :  { %4030 = vrcp.f32 %v430_v20  ;;  %v637_v34 = vpop.xlane.xlu0 %636 }
 0x7a4   :  { %v634_v21 = vpop.xlane.xlu1 %633 }
 0x7a5   :  { %4032 = vrcp.f32 %v634_v21  ;;  %v3219_v21 = vld [vmem:[%s4734_s3 + $0x3] ss:$0 sm:$0xff] }
 0x7a6   :  { %4034 = vrcp.f32 %v637_v34 }
 0x7a8   :  { %v3951_v22 = vpop.permute.xlu1 %3950 }
 0x7a9   :  { %v3953_v24 = vunpack.i.h.bf16 %v3951_v22  ;;  %v3952_v25 = vunpack.i.l.bf16 %v3951_v22 }
 0x7aa   :  { %v4025_v10 = vpop.eup %4024 }
 0x7ab   :  { %v4027_v6 = vpop.eup %4026  ;;  %v3726_v1 = vpack.c.bf16 %v3953_v24, %v3952_v25  ;;  %v1043_v26 = vsel %vm415_vm12, %v4025_v10, 0.0 }
 0x7ac   :  { %v4029_v27 = vpop.eup %4028  ;;  %1044 = vadd.xlane.f32.xlu0 %v1043_v26  ;;  %v1040_v28 = vsel %vm415_vm12, %v4027_v6, 0.0 }
 0x7ad   :  { %v4031_v29 = vpop.eup %4030  ;;  %1041 = vadd.xlane.f32.xlu1 %v1040_v28  ;;  %3727 = vmatprep.subr.bf16.mxu0 %v3726_v1  ;;  %v4369_v32 = vmul.f32 %v4029_v27, %v4017_v60  ;;  %v1196_v60 = vld [vmem:[#allocation2 + $0x80] sm:$0xff] }
 0x7ae   :  { %3729 = vmatpush3.bf16.msra.mxu0 %v3726_v1  ;;  %v4367_v30 = vmul.f32 %v4031_v29, %v4019_v62  ;;  %v3764_v62 = vpack.c.bf16 %v1197_v61, %v1196_v60 }
 0x7af   :  { %v4033_v31 = vpop.eup %4032 }
 0x7b0   :  { %3465 = vmatprep.mubr.msk.f32.mxu0 %vm415_vm12, %v4367_v30  ;;  %v4373_v33 = vmul.f32 %v4033_v31, %v4023_v3  ;;  %v4035_v47 = vpop.eup %4034 }
 0x7b1   :  { %3466 = vmatmul.mubr.msk.f32.vlgmr.msra.gmra.mrb[2].mxu0 %vm415_vm12, %v4369_v32 }
 0x7b2   :  { %3479 = vmatprep.mubr.msk.f32.mxu0 %vm415_vm12, %v4373_v33 }
 0x7be   :  { %3960 = vrot.lane.b32.xlu1 %v4259_v13, %s4163_s27 }
 0x7c2   :  { %3955 = vrot.lane.b32.xlu0 %v4259_v13, %s4164_s28  ;;  %v4384_v13 = vmul.f32 %v4035_v47, %v4357_v0 }
 0x839   :  { %v1045_v37 = vpop.xlane.xlu0 %1044 }
 0x83a   :  { %4036 = vrcp.f32 %v1045_v37  ;;  %v1042_v38 = vpop.xlane.xlu1 %1041 }
 0x83b   :  { %4038 = vrcp.f32 %v1042_v38 }
 0x83d   :  { %v3956_v39 = vpop.permute.xlu0 %3955 }
 0x83e   :  { %v3958_v40 = vunpack.i.h.bf16 %v3956_v39  ;;  %v3957_v41 = vunpack.i.l.bf16 %v3956_v39  ;;  %v3961_v42 = vpop.permute.xlu1 %3960 }
 0x83f   :  { %v3963_v43 = vunpack.i.h.bf16 %v3961_v42  ;;  %v3962_v44 = vunpack.i.l.bf16 %v3961_v42  ;;  %v1327_v42 = vld [vmem:[#allocation2 + $0x98] sm:$0xff] }
 0x840   :  { %v3736_v45 = vpack.c.bf16 %v3958_v40, %v3957_v41 }
 0x841   :  { %v3756_v48 = vpack.c.bf16 %v3963_v43, %v3962_v44  ;;  %v1328_v44 = vld [vmem:[#allocation2 + $0xa0] sm:$0xff] }
 0x842   :  { %3737 = vmatprep.subr.bf16.mxu0 %v3736_v45 }
 0x843   :  { %3739 = vmatpush3.bf16.msra.mxu0 %v3736_v45  ;;  %v1329_v45 = vld [vmem:[#allocation2 + $0xa8] sm:$0xff] }
 0x844   :  { %v4037_v16 = vpop.eup %4036  ;;  %3757 = vmatprep.subr.bf16.mxu0 %v3756_v48  ;;  %v3772_v47 = vpack.c.bf16 %v1329_v45, %v1328_v44 }
 0x845   :  { %v4039_v51 = vpop.eup %4038  ;;  %v4390_v54 = vmul.f32 %v4037_v16, %v4025_v10 }
 0x846   :  { %3480 = vmatmul.mubr.msk.f32.vlgmr.msra.gmra.mrb[4].mxu0 %vm415_vm12, %v4384_v13  ;;  %v4388_v53 = vmul.f32 %v4039_v51, %v4027_v6 }
 0x847   :  { %3759 = vmatpush3.bf16.msra.mxu0 %v3756_v48 }
 0x848   :  { %3507 = vmatprep.mubr.msk.f32.mxu0 %vm415_vm12, %v4388_v53  ;;  %3761 = vmatprep.subr.bf16.mxu0 %v3760_v59 }
 0x84a   :  { %3508 = vmatmul.mubr.msk.f32.vlgmr.msra.gmra.mrb[6].mxu0 %vm415_vm12, %v4390_v54 }
 0x84b   :  { %3763 = vmatpush3.bf16.msra.mxu0 %v3760_v59  ;;  %v3222_v59 = vld [vmem:[%s4734_s3 + $0x4] ss:$0 sm:$0xff] }
 0x84c   :  { %3765 = vmatprep.subr.bf16.mxu0 %v3764_v62 }
 0x84f   :  { %3767 = vmatpush3.bf16.msra.mxu0 %v3764_v62 }
 0x884   :  { %v3467_v55 = vpop.f32.mrb[2].mxu0 }
 0x885   :  { %v516_v56 = vpop.f32.mrb[3].mxu0 }
 0x919   :  { %v3481_v63 = vpop.f32.mrb[4].mxu0 }
 0x91a   :  { %1168 = vrot.lane.b32.xlu0 %v3481_v63, %s4148_s29  ;;  %v720_v0 = vpop.f32.mrb[5].mxu0  ;;  %v3223_v63 = vld [vmem:[%s4734_s3 + $0x5] ss:$0 sm:$0xff] }
 0x91b   :  { %1166 = vrot.lane.b32.xlu1 %v720_v0, %s4148_s29 }
 0x91d   :  { %v3509_v2 = vpop.f32.mrb[6].mxu0 }
 0x91e   :  { %1176 = vrot.lane.b32.xlu0 %v4348_v46, %s4165_s30  ;;  %v1128_v3 = vpop.f32.mrb[7].mxu0 }
 0x91f   :  { %1174 = vrot.lane.b32.xlu1 %v4350_v49, %s4165_s30 }
 0x922   :  { %1184 = vrot.lane.b32.xlu0 %v3509_v2, %s4166_s6 }
 0x923   :  { %1182 = vrot.lane.b32.xlu1 %v1128_v3, %s4166_s6 }
 0x98c   :  { %v1169_v5 = vpop.permute.xlu0 %1168 }
 0x98d   :  { %v1167_v8 = vpop.permute.xlu1 %1166  ;;  %v1189_v15 = vsel %vm327_vm8, %v3467_v55, %v1169_v5 }
 0x98e   :  { %v1188_v12 = vsel %vm327_vm8, %v516_v56, %v1167_v8  ;;  %v1434_v8 = vld [vmem:[#allocation2 + $0xb0] sm:$0xff] }
 0x990   :  { %v1177_v9 = vpop.permute.xlu0 %1176 }
 0x991   :  { %v1175_v11 = vpop.permute.xlu1 %1174  ;;  %v1191_v49 = vsel %vm415_vm12, %v1189_v15, %v1177_v9  ;;  %v1435_v9 = vld [vmem:[#allocation2 + $0xb8] sm:$0xff] }
 0x992   :  { %v1190_v46 = vsel %vm415_vm12, %v1188_v12, %v1175_v11  ;;  %v3776_v11 = vpack.c.bf16 %v1435_v9, %v1434_v8  ;;  %v1436_v12 = vld [vmem:[#allocation2 + $0xc0] sm:$0xff] }
 0x994   :  { %v1185_v14 = vpop.permute.xlu0 %1184  ;;  %3777 = vmatprep.subr.bf16.mxu0 %v3776_v11 }
 0x995   :  { %v1183_v17 = vpop.permute.xlu1 %1182  ;;  %v1193_v20 = vsel %vm1148_vm13, %v1191_v49, %v1185_v14  ;;  %v1437_v14 = vld [vmem:[#allocation2 + $0xc8] sm:$0xff] }
 0x996   :  { %v1192_v18 = vsel %vm1148_vm13, %v1190_v46, %v1183_v17  ;;  %v3780_v15 = vpack.c.bf16 %v1437_v14, %v1436_v12  ;;  %v1438_v46 = vld [vmem:[#allocation2 + $0xd0] sm:$0xff]  ;;  %v1439_v17 = vld [vmem:[#allocation2 + $0xd8] sm:$0xff] }
 0x997   :  { %3518 = vmatprep.mubr.msk.f32.mxu0 %vm166_vm7, %v1192_v18  ;;  %v3784_v49 = vpack.c.bf16 %v1439_v17, %v1438_v46  ;;  %v1440_v18 = vld [vmem:[#allocation2 + $0xe0] sm:$0xff]  ;;  %v1572_v12 = vld [vmem:[#allocation2 + $0xf8] sm:$0xff]  ;;  %v1574_v46 = vld [vmem:[#allocation2 + $0x108] sm:$0xff] }
 0x998   :  { %3519 = vmatmul.mubr.msk.f32.vlgmr.msra.gmra.mrb[8].mxu0 %vm166_vm7, %v1193_v20  ;;  %v1441_v20 = vld [vmem:[#allocation2 + $0xe8] sm:$0xff] }
 0x999   :  { %3779 = vmatpush3.bf16.msra.mxu0 %v3776_v11 }
 0x99a   :  { %3781 = vmatprep.subr.bf16.mxu0 %v3780_v15 }
 0x99d   :  { %3783 = vmatpush3.bf16.msra.mxu0 %v3780_v15  ;;  %v1573_v15 = vld [vmem:[#allocation2 + $0x100] sm:$0xff] }
 0x99e   :  { %3785 = vmatprep.subr.bf16.mxu0 %v3784_v49  ;;  %v3796_v17 = vpack.c.bf16 %v1574_v46, %v1573_v15 }
 0x9a1   :  { %3787 = vmatpush3.bf16.msra.mxu0 %v3784_v49 }
 0xa6b   :  { %v3520_v22 = vpop.f32.mrb[8].mxu0 }
 0xa6c   :  { %v1281_v24 = vadd.f32 %v3520_v22, %v3219_v21  ;;  %v1275_v25 = vpop.f32.mrb[9].mxu0  ;;  %v3224_v22 = vld [vmem:[%s4734_s3 + $0x6] ss:$0 sm:$0xff] }
 0xa6d   :  { %v1276_v10 = vadd.f32 %v3219_v21, %v1275_v25  ;;  %v3788_v21 = vpack.c.bf16 %v1441_v20, %v1440_v18 }
 0xa6e   :  { %v1285_v6 = vadd.f32 %v1281_v24, %v4244_v7 }
 0xa6f   :  { %v1284_v1 = vadd.f32 %v1276_v10, %v4240_v4  ;;  %v1326_v4 = vld [vmem:[#allocation2 + $0x90] sm:$0xff]  ;;  %3789 = vmatprep.subr.bf16.mxu0 %v3788_v21 }
 0xa70   :  { %v1291_v26 = vsel %vm166_vm7, %v1285_v6, 0.0  ;;  %v3768_v43 = vpack.c.bf16 %v1327_v42, %v1326_v4  ;;  %3791 = vmatpush3.bf16.msra.mxu0 %v3788_v21 }
 0xa71   :  { %1292 = vadd.xlane.f32.xlu0 %v1291_v26  ;;  %v1288_v27 = vsel %vm166_vm7, %v1284_v1, 0.0 }
 0xa72   :  { %1289 = vadd.xlane.f32.xlu1 %v1288_v27  ;;  %3769 = vmatprep.subr.bf16.mxu1 %v3768_v43 }
 0xa73   :  { %3771 = vmatpush3.bf16.msra.mxu1 %v3768_v43 }
 0xa74   :  { %3773 = vmatprep.subr.bf16.mxu1 %v3772_v47 }
 0xa77   :  { %3775 = vmatpush3.bf16.msra.mxu1 %v3772_v47  ;;  %v3227_v47 = vld [vmem:[%s4734_s3 + $0x7] ss:$0 sm:$0xff] }
 0xafe   :  { %v1293_v28 = vpop.xlane.xlu0 %1292 }
 0xaff   :  { %v1295_v29 = vmul.f32 0.03125, %v1293_v28  ;;  %v1290_v31 = vpop.xlane.xlu1 %1289 }
 0xb00   :  { %v1294_v34 = vmul.f32 0.03125, %v1290_v31 }
 0xb01   :  { %v1297_v37 = vsub.f32 %v1285_v6, %v1295_v29 }
 0xb02   :  { %v1296_v38 = vsub.f32 %v1284_v1, %v1294_v34 }
 0xb03   :  { %v1299_v39 = vmul.f32 %v1297_v37, %v1297_v37 }
 0xb04   :  { %v1298_v40 = vmul.f32 %v1296_v38, %v1296_v38 }
 0xb05   :  { %v1303_v41 = vsel %vm166_vm7, %v1299_v39, 0.0 }
 0xb06   :  { %1304 = vadd.xlane.f32.xlu1 %v1303_v41  ;;  %v1300_v7 = vsel %vm166_vm7, %v1298_v40, 0.0 }
 0xb07   :  { %1301 = vadd.xlane.f32.xlu0 %v1300_v7 }
 0xb93   :  { %v1305_v48 = vpop.xlane.xlu1 %1304 }
 0xb94   :  { %v1307_v16 = vmul.f32 0.03125, %v1305_v48  ;;  %v1302_v51 = vpop.xlane.xlu0 %1301 }
 0xb95   :  { %v1306_v55 = vmul.f32 0.03125, %v1302_v51 }
 0xb96   :  { %v1309_v56 = vadd.f32 1e-12, %v1307_v16 }
 0xb97   :  { %v1308_v57 = vadd.f32 1e-12, %v1306_v55 }
 0xb98   :  { %4040 = vrsqrt.f32 %v1309_v56 }
 0xb99   :  { %4042 = vrsqrt.f32 %v1308_v57 }
 0xba2   :  { %v4041_v58 = vpop.eup %4040 }
 0xba3   :  { %v4043_v60 = vpop.eup %4042  ;;  %v1313_v61 = vmul.f32 %v4041_v58, %v1297_v37 }
 0xba4   :  { %v1312_v62 = vmul.f32 %v4043_v60, %v1296_v38 }
 0xba5   :  { %v1319_v0 = vmul.f32 %v3222_v59, %v1313_v61 }
 0xba6   :  { %v1318_v2 = vmul.f32 %v3222_v59, %v1312_v62 }
 0xba7   :  { %v1325_v5 = vadd.f32 %v3223_v63, %v1319_v0 }
 0xba8   :  { %v1324_v3 = vadd.f32 %v3223_v63, %v1318_v2 }
 0xbaa   :  { %3529 = vmatprep.mubr.msk.f32.mxu1 %vm166_vm7, %v1324_v3 }
 0xbab   :  { %3530 = vmatmul.mubr.msk.f32.vlgmr.msra.gmra.mrb[12].mxu1 %vm166_vm7, %v1325_v5 }
 0xc7e   :  { %v3531_v24 = vpop.f32.mrb[12].mxu1 }
 0xc7f   :  { %v1413_v25 = vadd.f32 %v3531_v24, %v3224_v22  ;;  %v1407_v10 = vpop.f32.mrb[13].mxu1 }
 0xc80   :  { %v1408_v6 = vadd.f32 %v3224_v22, %v1407_v10  ;;  %v3230_v10 = vld [vmem:[%s4734_s3 + $0x8] ss:$0 sm:$0xff] }
 0xc81   :  { %v1417_v1 = vmul.f32 %v1413_v25, %v1413_v25 }
 0xc82   :  { %v1416_v26 = vmul.f32 %v1408_v6, %v1408_v6 }
 0xc83   :  { %v1419_v27 = vmul.f32 %v1417_v1, %v1413_v25 }
 0xc84   :  { %v1418_v28 = vmul.f32 %v1416_v26, %v1408_v6 }
 0xc85   :  { %v1421_v29 = vmul.f32 0.044715, %v1419_v27  ;;  %v3231_v27 = vld [vmem:[%s4734_s3 + $0x9] ss:$0 sm:$0xff] }
 0xc86   :  { %v1420_v31 = vmul.f32 0.044715, %v1418_v28 }
 0xc87   :  { %v1423_v34 = vadd.f32 %v1421_v29, %v1413_v25 }
 0xc88   :  { %v1422_v37 = vadd.f32 %v1420_v31, %v1408_v6 }
 0xc89   :  { %v1425_v38 = vmul.f32 0.7978846, %v1423_v34 }
 0xc8a   :  { %v1424_v39 = vmul.f32 0.7978846, %v1422_v37  ;;  %v3232_v37 = vld [vmem:[%s4734_s3 + $0xa] ss:$0 sm:$0xff] }
 0xc8b   :  { %4044 = vtanh.f32 %v1425_v38 }
 0xc8c   :  { %4046 = vtanh.f32 %v1424_v39 }
 0xc95   :  { %v4045_v40 = vpop.eup %4044 }
 0xc96   :  { %v4047_v41 = vpop.eup %4046  ;;  %v1429_v7 = vadd.f32 1.0, %v4045_v40 }
 0xc97   :  { %v1428_v4 = vadd.f32 1.0, %v4047_v41 }
 0xc98   :  { %v1431_v42 = vmul.f32 0.5, %v1429_v7 }
 0xc99   :  { %v1430_v43 = vmul.f32 0.5, %v1428_v4 }
 0xc9a   :  { %v1433_v45 = vmul.f32 %v1431_v42, %v1413_v25 }
 0xc9b   :  { %v1432_v44 = vmul.f32 %v1430_v43, %v1408_v6 }
 0xc9d   :  { %3548 = vmatprep.mubr.msk.f32.mxu0 %vm1447_vm14, %v1432_v44 }
 0xc9e   :  { %3549 = vmatmul.mubr.msk.f32.vlgmr.msra.gmra.mrb[10].mxu0 %vm1447_vm14, %v1433_v45 }
 0xd71   :  { %v3550_v48 = vpop.f32.mrb[10].mxu0 }
 0xd72   :  { %v1526_v16 = vadd.f32 %v3550_v48, %v3227_v47  ;;  %v1520_v51 = vpop.f32.mrb[11].mxu0 }
 0xd73   :  { %v1521_v55 = vadd.f32 %v3227_v47, %v1520_v51 }
 0xd74   :  { %v1530_v56 = vadd.f32 %v1526_v16, %v1325_v5 }
 0xd75   :  { %v1529_v57 = vadd.f32 %v1521_v55, %v1324_v3  ;;  %v1571_v3 = vld [vmem:[#allocation2 + $0xf0] sm:$0xff] }
 0xd76   :  { %v1536_v58 = vsel %vm166_vm7, %v1530_v56, 0.0  ;;  %v3792_v14 = vpack.c.bf16 %v1572_v12, %v1571_v3 }
 0xd77   :  { %1537 = vadd.xlane.f32.xlu1 %v1536_v58  ;;  %v1533_v59 = vsel %vm166_vm7, %v1529_v57, 0.0 }
 0xd78   :  { %1534 = vadd.xlane.f32.xlu0 %v1533_v59  ;;  %3793 = vmatprep.subr.bf16.mxu1 %v3792_v14 }
 0xd79   :  { %3795 = vmatpush3.bf16.msra.mxu1 %v3792_v14 }
 0xd7a   :  { %3797 = vmatprep.subr.bf16.mxu1 %v3796_v17 }
 0xd7d   :  { %3799 = vmatpush3.bf16.msra.mxu1 %v3796_v17 }
 0xe04   :  { %v1538_v60 = vpop.xlane.xlu1 %1537 }
 0xe05   :  { %v1540_v61 = vmul.f32 0.03125, %v1538_v60  ;;  %v1535_v62 = vpop.xlane.xlu0 %1534 }
 0xe06   :  { %v1539_v63 = vmul.f32 0.03125, %v1535_v62 }
 0xe07   :  { %v1542_v0 = vsub.f32 %v1530_v56, %v1540_v61 }
 0xe08   :  { %v1541_v2 = vsub.f32 %v1529_v57, %v1539_v63 }
 0xe09   :  { %v1544_v8 = vmul.f32 %v1542_v0, %v1542_v0 }
 0xe0a   :  { %v1543_v9 = vmul.f32 %v1541_v2, %v1541_v2 }
 0xe0b   :  { %v1548_v11 = vsel %vm166_vm7, %v1544_v8, 0.0 }
 0xe0c   :  { %1549 = vadd.xlane.f32.xlu1 %v1548_v11  ;;  %v1545_v5 = vsel %vm166_vm7, %v1543_v9, 0.0 }
 0xe0d   :  { %1546 = vadd.xlane.f32.xlu0 %v1545_v5 }
 0xe99   :  { %v1550_v49 = vpop.xlane.xlu1 %1549 }
 0xe9a   :  { %v1552_v18 = vmul.f32 0.03125, %v1550_v49  ;;  %v1547_v20 = vpop.xlane.xlu0 %1546 }
 0xe9b   :  { %v1551_v21 = vmul.f32 0.03125, %v1547_v20 }
 0xe9c   :  { %v1554_v22 = vadd.f32 1e-12, %v1552_v18 }
 0xe9d   :  { %v1553_v24 = vadd.f32 1e-12, %v1551_v21 }
 0xe9e   :  { %4048 = vrsqrt.f32 %v1554_v22 }
 0xe9f   :  { %4050 = vrsqrt.f32 %v1553_v24 }
 0xea8   :  { %v4049_v25 = vpop.eup %4048 }
 0xea9   :  { %v4051_v6 = vpop.eup %4050  ;;  %v1558_v1 = vmul.f32 %v4049_v25, %v1542_v0 }
 0xeaa   :  { %v1557_v26 = vmul.f32 %v4051_v6, %v1541_v2 }
 0xeab   :  { %v1564_v28 = vmul.f32 %v3230_v10, %v1558_v1 }
 0xeac   :  { %v1563_v29 = vmul.f32 %v3230_v10, %v1557_v26 }
 0xead   :  { %v4449_v34 = vadd.f32 %v3231_v27, %v1564_v28 }
 0xeae   :  { %v4447_v31 = vadd.f32 %v3231_v27, %v1563_v29 }
 0xeb0   :  { %3559 = vmatprep.mubr.msk.f32.mxu1 %vm166_vm7, %v4447_v31 }
 0xeb1   :  { %3560 = vmatmul.mubr.msk.f32.vlgmr.msra.gmra.mrb[14].mxu1 %vm166_vm7, %v4449_v34 }
 0xf84   :  { %v3561_v38 = vpop.f32.mrb[14].mxu1 }
 0xf85   :  { %v4458_v39 = vadd.f32 %v3561_v38, %v3232_v37  ;;  %v1652_v40 = vpop.f32.mrb[15].mxu1 }
 0xf86   :  { %v4460_v41 = vadd.f32 %v3232_v37, %v1652_v40 }
 0xf88   :  { %3566 = vmatprep.mubr.msk.f32.mxu1 %vm327_vm8, %v4460_v41  ;;  %v4466_v7 = vpack.i.bf16 %v4458_v39, %v4460_v41 }
 0xf8a   :  { %3970 = vrot.lane.b32.xlu1 %v4466_v7, %s4152_s15  ;;  %3965 = vrot.lane.b32.xlu0 %v4466_v7, %s4153_s16  ;;  %s3172_s15 = sshll.u32 %s4169_s8, 4  ;;  %s3173_s15 = int_to_ptr.vmem [resolvable:$true] %s3172_s15 }
 0xf8b   :  { %s4120_s16 = scalar_lea.vmem %s3173_s15, 32  ;;  %p4125_p9 = scmp.lt.s32.totalorder %s3173_s15, %s3173_s15 }
 0xf8c   :  { %p4121_p8 = scmp.ne.s32.totalorder %s3173_s15, %s4120_s16  ;;  %p4126_p10 = scmp.lt.s32.totalorder %s4120_s16, %s4120_s16 }
 0xf8e   :  { %1863 = vrot.lane.b32.xlu1 %v4460_v41, %s4154_s17  ;;  %1865 = vrot.lane.b32.xlu0 %v4458_v39, %s4154_s17  ;;  %p4127_p11 = por %p4126_p10, %p4125_p9 }
 0xf90   :  { %p4128_p12 = pnand %p4127_p11, %p4121_p8 }
 0xffc   :  { %v3971_v4 = vpop.permute.xlu1 %3970  ;;  %v3966_v42 = vpop.permute.xlu0 %3965 }
 0xffd   :  { %v3973_v43 = vunpack.i.h.bf16 %v3971_v4  ;;  %v3972_v44 = vunpack.i.l.bf16 %v3971_v4  ;;  %v3968_v45 = vunpack.i.h.bf16 %v3966_v42  ;;  %v3967_v47 = vunpack.i.l.bf16 %v3966_v42 }
 0xfff   :  { %v3800_v48 = vpack.c.bf16 %v3968_v45, %v3967_v47  ;;  %v3810_v16 = vpack.c.bf16 %v3973_v43, %v3972_v44 }
0x1000   :  { %v1864_v51 = vpop.permute.xlu1 %1863  ;;  %v1866_v55 = vpop.permute.xlu0 %1865 }
0x1001   :  { %3802 = vmatprep.subr.msk.bf16.mxu1 %vm4279_vm9, %v3800_v48 }
0x1002   :  { %3805 = vmatpush3.bf16.xpose.msk.msra.mxu1 %vm4279_vm9, %v3800_v48 }
0x1003   :  { %3812 = vmatprep.subr.msk.bf16.mxu1 %vm4279_vm9, %v3810_v16 }
0x1009   :  { %3567 = vmatmul.mubr.msk.f32.vlgmr.msra.gmra.mrb[16].mxu1 %vm327_vm8, %v4458_v39 }
0x100a   :  { %3815 = vmatpush3.bf16.xpose.msk.msra.mxu1 %vm4279_vm9, %v3810_v16  ;;  %3580 = vmatprep.mubr.msk.f32.mxu1 %vm327_vm8, %v1864_v51 }
0x1011   :  { %3581 = vmatmul.mubr.msk.f32.vlgmr.msra.gmra.mrb[18].mxu1 %vm327_vm8, %v1866_v55 }
0x10dc   :  { %v3568_v56 = vpop.f32.mrb[16].mxu1 }
0x10dd   :  { %v1751_v57 = vmul.f32 0.35355338, %v3568_v56  ;;  %v1741_v58 = vpop.f32.mrb[17].mxu1 }
0x10de   :  { %v1750_v59 = vmul.f32 0.35355338, %v1741_v58 }
0x10df   :  { %v1753_v60 = vadd.f32 %v1751_v57, %v4308_v50 }
0x10e0   :  { %v1752_v61 = vadd.f32 %v1750_v59, %v4310_v52 }
0x10e1   :  { %v1757_v62 = vsel %vm415_vm12, %v1753_v60, -inf }
0x10e2   :  { %1758 = vmax.xlane.f32.xlu0 %v1757_v62  ;;  %v1754_v63 = vsel %vm415_vm12, %v1752_v61, -inf }
0x10e3   :  { %1755 = vmax.xlane.f32.xlu1 %v1754_v63 }
0x10e4   :  { %v3582_v0 = vpop.f32.mrb[18].mxu1 }
0x10e5   :  { %v1955_v2 = vmul.f32 0.35355338, %v3582_v0  ;;  %v1945_v8 = vpop.f32.mrb[19].mxu1 }
0x10e6   :  { %v1954_v9 = vmul.f32 0.35355338, %v1945_v8 }
0x10e7   :  { %v1957_v11 = vadd.f32 %v1955_v2, %v4308_v50 }
0x10e8   :  { %v1956_v5 = vadd.f32 %v1954_v9, %v4310_v52 }
0x10e9   :  { %v1961_v3 = vsel %vm415_vm12, %v1957_v11, -inf }
0x10ea   :  { %1962 = vmax.xlane.f32.xlu1 %v1961_v3  ;;  %v1958_v12 = vsel %vm415_vm12, %v1956_v5, -inf }
0x10eb   :  { %1959 = vmax.xlane.f32.xlu0 %v1958_v12 }
0x116f   :  { %v1759_v14 = vpop.xlane.xlu0 %1758 }
0x1170   :  { %v1761_v15 = vsub.f32 %v1753_v60, %v1759_v14  ;;  %v1756_v46 = vpop.xlane.xlu1 %1755 }
0x1171   :  { %v1760_v17 = vsub.f32 %v1752_v61, %v1756_v46 }
0x1172   :  { %v1764_v49 = vmul.f32 1.442695, %v1761_v15 }
0x1173   :  { %v1762_v18 = vmul.f32 1.442695, %v1760_v17 }
0x1174   :  { %4052 = vpow2.f32 %v1764_v49 }
0x1175   :  { %4054 = vpow2.f32 %v1762_v18 }
0x1177   :  { %v1963_v20 = vpop.xlane.xlu1 %1962 }
0x1178   :  { %v1965_v21 = vsub.f32 %v1957_v11, %v1963_v20  ;;  %v1960_v22 = vpop.xlane.xlu0 %1959 }
0x1179   :  { %v1964_v24 = vsub.f32 %v1956_v5, %v1960_v22 }
0x117a   :  { %v1968_v25 = vmul.f32 1.442695, %v1965_v21 }
0x117b   :  { %v1966_v10 = vmul.f32 1.442695, %v1964_v24 }
0x117c   :  { %4056 = vpow2.f32 %v1968_v25 }
0x117d   :  { %4058 = vpow2.f32 %v1966_v10 }
0x117e   :  { %v4053_v6 = vpop.eup %4052 }
0x117f   :  { %v4055_v1 = vpop.eup %4054  ;;  %v1769_v26 = vsel %vm415_vm12, %v4053_v6, 0.0 }
0x1180   :  { %1770 = vadd.xlane.f32.xlu1 %v1769_v26  ;;  %v1766_v27 = vsel %vm415_vm12, %v4055_v1, 0.0 }
0x1181   :  { %1767 = vadd.xlane.f32.xlu0 %v1766_v27 }
0x1186   :  { %v4057_v28 = vpop.eup %4056 }
0x1187   :  { %v4059_v29 = vpop.eup %4058  ;;  %v1973_v37 = vsel %vm415_vm12, %v4057_v28, 0.0 }
0x1188   :  { %1974 = vadd.xlane.f32.xlu1 %v1973_v37  ;;  %v1970_v38 = vsel %vm415_vm12, %v4059_v29, 0.0 }
0x1189   :  { %1971 = vadd.xlane.f32.xlu0 %v1970_v38 }
0x1199   :  { %3980 = vrot.lane.b32.xlu1 %v4466_v7, %s4164_s28 }
0x119d   :  { %3985 = vrot.lane.b32.xlu1 %v4466_v7, %s4155_s18 }
0x119f   :  { %3975 = vrot.lane.b32.xlu0 %v4466_v7, %s4162_s26 }
0x11a1   :  { %2069 = vrot.lane.b32.xlu1 %v4458_v39, %s4156_s19 }
0x11a3   :  { %2067 = vrot.lane.b32.xlu0 %v4460_v41, %s4156_s19 }
0x120d   :  { %v1771_v4 = vpop.xlane.xlu1 %1770 }
0x120e   :  { %v1768_v40 = vpop.xlane.xlu0 %1767 }
0x120f   :  { %4060 = vrcp.f32 %v1768_v40 }
0x1210   :  { %4062 = vrcp.f32 %v1771_v4 }
0x1215   :  { %v1975_v42 = vpop.xlane.xlu1 %1974 }
0x1216   :  { %v1972_v43 = vpop.xlane.xlu0 %1971 }
0x1217   :  { %4064 = vrcp.f32 %v1972_v43 }
0x1218   :  { %4066 = vrcp.f32 %v1975_v42 }
0x1219   :  { %v4061_v44 = vpop.eup %4060  ;;  %v3981_v45 = vpop.permute.xlu1 %3980 }
0x121a   :  { %v3976_v47 = vpop.permute.xlu0 %3975  ;;  %v4510_v48 = vmul.f32 %v4061_v44, %v4055_v1  ;;  %v3983_v16 = vunpack.i.h.bf16 %v3981_v45  ;;  %v3982_v51 = vunpack.i.l.bf16 %v3981_v45  ;;  %v4063_v59 = vpop.eup %4062 }
0x121b   :  { %v3978_v55 = vunpack.i.h.bf16 %v3976_v47  ;;  %v3977_v56 = vunpack.i.l.bf16 %v3976_v47  ;;  %v4514_v0 = vmul.f32 %v4063_v59, %v4053_v6 }
0x121c   :  { %3573 = vmatprep.mubr.msk.f32.mxu0 %vm415_vm12, %v4510_v48  ;;  %v3816_v60 = vpack.c.bf16 %v3983_v16, %v3982_v51 }
0x121d   :  { %v3806_v57 = vpack.c.bf16 %v3978_v55, %v3977_v56  ;;  %v3986_v58 = vpop.permute.xlu1 %3985 }
0x121e   :  { %v3988_v61 = vunpack.i.h.bf16 %v3986_v58  ;;  %v3987_v62 = vunpack.i.l.bf16 %v3986_v58  ;;  %v2068_v5 = vpop.permute.xlu0 %2067 }
0x121f   :  { %3807 = vmatprep.subr.bf16.mxu0 %v3806_v57 }
0x1220   :  { %3809 = vmatpush3.bf16.msra.mxu0 %v3806_v57  ;;  %v3820_v9 = vpack.c.bf16 %v3988_v61, %v3987_v62 }
0x1221   :  { %v4065_v63 = vpop.eup %4064  ;;  %3817 = vmatprep.subr.bf16.mxu0 %v3816_v60  ;;  %v2070_v3 = vpop.permute.xlu1 %2069 }
0x1222   :  { %v4067_v2 = vpop.eup %4066  ;;  %v4516_v8 = vmul.f32 %v4065_v63, %v4059_v29 }
0x1223   :  { %3574 = vmatmul.mubr.msk.f32.vlgmr.msra.gmra.mrb[12].mxu0 %vm415_vm12, %v4514_v0  ;;  %v4522_v11 = vmul.f32 %v4067_v2, %v4057_v28 }
0x1224   :  { %3819 = vmatpush3.bf16.msra.mxu0 %v3816_v60  ;;  %3587 = vmatprep.mubr.msk.f32.mxu0 %vm415_vm12, %v4516_v8 }
0x1225   :  { %3822 = vmatprep.subr.msk.bf16.mxu0 %vm4279_vm9, %v3820_v9 }
0x1227   :  { %3588 = vmatmul.mubr.msk.f32.vlgmr.msra.gmra.mrb[14].mxu0 %vm415_vm12, %v4522_v11 }
0x1228   :  { %3594 = vmatprep.mubr.msk.f32.mxu0 %vm327_vm8, %v2068_v5 }
0x122d   :  { %3825 = vmatpush3.bf16.xpose.msk.msra.mxu0 %vm4279_vm9, %v3820_v9 }
0x1234   :  { %3595 = vmatmul.mubr.msk.f32.vlgmr.msra.gmra.mrb[16].mxu0 %vm327_vm8, %v2070_v3 }
0x12f6   :  { %v4532_v12 = vpop.f32.mrb[12].mxu0 }
0x12f7   :  { %v4534_v14 = vpop.f32.mrb[13].mxu0 }
0x12fa   :  { %v4536_v15 = vpop.f32.mrb[14].mxu0 }
0x12fb   :  { %v4538_v46 = vpop.f32.mrb[15].mxu0 }
0x1307   :  { %v3596_v17 = vpop.f32.mrb[16].mxu0 }
0x1308   :  { %v2159_v49 = vmul.f32 0.35355338, %v3596_v17  ;;  %v2149_v18 = vpop.f32.mrb[17].mxu0 }
0x1309   :  { %v2158_v20 = vmul.f32 0.35355338, %v2149_v18 }
0x130a   :  { %v2161_v21 = vadd.f32 %v2159_v49, %v4308_v50 }
0x130b   :  { %v2160_v22 = vadd.f32 %v2158_v20, %v4310_v52 }
0x130c   :  { %v2165_v24 = vsel %vm415_vm12, %v2161_v21, -inf }
0x130d   :  { %2166 = vmax.xlane.f32.xlu1 %v2165_v24  ;;  %v2162_v25 = vsel %vm415_vm12, %v2160_v22, -inf }
0x130e   :  { %2163 = vmax.xlane.f32.xlu0 %v2162_v25 }
0x131e   :  { %3990 = vrot.lane.b32.xlu1 %v4466_v7, %s4159_s1 }
0x1322   :  { %2271 = vrot.lane.b32.xlu1 %v4460_v41, %s4160_s24 }
0x1326   :  { %2273 = vrot.lane.b32.xlu1 %v4458_v39, %s4160_s24 }
0x139a   :  { %v2167_v10 = vpop.xlane.xlu1 %2166 }
0x139b   :  { %v2169_v6 = vsub.f32 %v2161_v21, %v2167_v10  ;;  %v2164_v1 = vpop.xlane.xlu0 %2163 }
0x139c   :  { %v2168_v26 = vsub.f32 %v2160_v22, %v2164_v1 }
0x139d   :  { %v2172_v27 = vmul.f32 1.442695, %v2169_v6 }
0x139e   :  { %v2170_v28 = vmul.f32 1.442695, %v2168_v26  ;;  %v3991_v29 = vpop.permute.xlu1 %3990 }
0x139f   :  { %4068 = vpow2.f32 %v2172_v27  ;;  %v3993_v37 = vunpack.i.h.bf16 %v3991_v29  ;;  %v3992_v38 = vunpack.i.l.bf16 %v3991_v29 }
0x13a0   :  { %4070 = vpow2.f32 %v2170_v28 }
0x13a1   :  { %v3826_v40 = vpack.c.bf16 %v3993_v37, %v3992_v38 }
0x13a2   :  { %v2272_v59 = vpop.permute.xlu1 %2271 }
0x13a3   :  { %3827 = vmatprep.subr.bf16.mxu1 %v3826_v40 }
0x13a4   :  { %3829 = vmatpush3.bf16.msra.mxu1 %v3826_v40 }
0x13a6   :  { %v2274_v60 = vpop.permute.xlu1 %2273 }
0x13a9   :  { %v4069_v4 = vpop.eup %4068 }
0x13aa   :  { %v2177_v41 = vsel %vm415_vm12, %v4069_v4, 0.0  ;;  %v4071_v42 = vpop.eup %4070 }
0x13ab   :  { %2178 = vadd.xlane.f32.xlu0 %v2177_v41  ;;  %v2174_v39 = vsel %vm415_vm12, %v4071_v42, 0.0  ;;  %v2533_v41 = vld [vmem:[#allocation2 + $0x120] sm:$0xff] }
0x13af   :  { %2175 = vadd.xlane.f32.xlu0 %v2174_v39  ;;  %v2534_v39 = vld [vmem:[#allocation2 + $0x128] sm:$0xff] }
0x13c5   :  { %3995 = vrot.lane.b32.xlu0 %v4466_v7, %s4161_s25 }
0x1438   :  { %v2179_v43 = vpop.xlane.xlu0 %2178 }
0x1439   :  { %4072 = vrcp.f32 %v2179_v43  ;;  %v3844_v43 = vpack.c.bf16 %v2534_v39, %v2533_v41 }
0x143c   :  { %v2176_v44 = vpop.xlane.xlu0 %2175 }
0x143d   :  { %4074 = vrcp.f32 %v2176_v44 }
0x1440   :  { %v3996_v45 = vpop.permute.xlu0 %3995 }
0x1441   :  { %v3998_v47 = vunpack.i.h.bf16 %v3996_v45  ;;  %v3997_v16 = vunpack.i.l.bf16 %v3996_v45 }
0x1443   :  { %v3830_v51 = vpack.c.bf16 %v3998_v47, %v3997_v16  ;;  %v4073_v55 = vpop.eup %4072 }
0x1444   :  { %v4558_v58 = vmul.f32 %v4073_v55, %v4069_v4  ;;  %v2531_v4 = vld [vmem:[#allocation2 + $0x110] sm:$0xff] }
0x1445   :  { %3832 = vmatprep.subr.msk.bf16.mxu1 %vm4279_vm9, %v3830_v51 }
0x1447   :  { %v4075_v56 = vpop.eup %4074 }
0x1448   :  { %v4556_v57 = vmul.f32 %v4075_v56, %v4071_v42 }
0x144a   :  { %3601 = vmatprep.mubr.msk.f32.mxu1 %vm415_vm12, %v4556_v57 }
0x144b   :  { %3602 = vmatmul.mubr.msk.f32.vlgmr.msra.gmra.mrb[20].mxu1 %vm415_vm12, %v4558_v58 }
0x144c   :  { %3835 = vmatpush3.bf16.xpose.msk.msra.mxu1 %vm4279_vm9, %v3830_v51  ;;  %3608 = vmatprep.mubr.msk.f32.mxu1 %vm327_vm8, %v2272_v59 }
0x1453   :  { %3609 = vmatmul.mubr.msk.f32.vlgmr.msra.gmra.mrb[22].mxu1 %vm327_vm8, %v2274_v60 }
0x151e   :  { %v3603_v61 = vpop.f32.mrb[20].mxu1 }
0x151f   :  { %v2262_v62 = vpop.f32.mrb[21].mxu1 }
0x1526   :  { %v3610_v63 = vpop.f32.mrb[22].mxu1 }
0x1527   :  { %v2363_v2 = vmul.f32 0.35355338, %v3610_v63  ;;  %v2353_v9 = vpop.f32.mrb[23].mxu1 }
0x1528   :  { %v2362_v5 = vmul.f32 0.35355338, %v2353_v9 }
0x1529   :  { %v2365_v3 = vadd.f32 %v2363_v2, %v4308_v50 }
0x152a   :  { %v2364_v17 = vadd.f32 %v2362_v5, %v4310_v52 }
0x152b   :  { %v2369_v49 = vsel %vm415_vm12, %v2365_v3, -inf }
0x152c   :  { %2370 = vmax.xlane.f32.xlu1 %v2369_v49  ;;  %v2366_v23 = vsel %vm415_vm12, %v2364_v17, -inf }
0x152d   :  { %2367 = vmax.xlane.f32.xlu0 %v2366_v23 }
0x153d   :  { %4000 = vrot.lane.b32.xlu1 %v4466_v7, %s4163_s27 }
0x1541   :  { %2505 = vrot.lane.b32.xlu1 %v4536_v15, %s4148_s29 }
0x1545   :  { %2511 = vrot.lane.b32.xlu1 %v2262_v62, %s4165_s30 }
0x15b9   :  { %v2371_v18 = vpop.xlane.xlu1 %2370 }
0x15ba   :  { %v2373_v20 = vsub.f32 %v2365_v3, %v2371_v18  ;;  %v2368_v21 = vpop.xlane.xlu0 %2367 }
0x15bb   :  { %v2372_v50 = vsub.f32 %v2364_v17, %v2368_v21 }
0x15bc   :  { %v2376_v22 = vmul.f32 1.442695, %v2373_v20 }
0x15bd   :  { %v2374_v52 = vmul.f32 1.442695, %v2372_v50  ;;  %v4001_v24 = vpop.permute.xlu1 %4000 }
0x15be   :  { %v4003_v25 = vunpack.i.h.bf16 %v4001_v24  ;;  %v4002_v10 = vunpack.i.l.bf16 %v4001_v24 }
0x15bf   :  { %4076 = vpow2.f32 %v2374_v52 }
0x15c0   :  { %v3836_v6 = vpack.c.bf16 %v4003_v25, %v4002_v10  ;;  %4078 = vpow2.f32 %v2376_v22 }
0x15c1   :  { %v2506_v16 = vpop.permute.xlu1 %2505 }
0x15c2   :  { %3837 = vmatprep.subr.bf16.mxu0 %v3836_v6  ;;  %v2526_v60 = vsel %vm327_vm8, %v4532_v12, %v2506_v16  ;;  %v3263_v16 = vld [vmem:[%s4734_s3 + $0xd] ss:$0 sm:$0xff] }
0x15c3   :  { %3839 = vmatpush3.bf16.msra.mxu0 %v3836_v6 }
0x15c5   :  { %v2512_v55 = vpop.permute.xlu1 %2511 }
0x15c9   :  { %v4077_v7 = vpop.eup %4076 }
0x15ca   :  { %v2378_v1 = vsel %vm415_vm12, %v4077_v7, 0.0  ;;  %v4079_v15 = vpop.eup %4078 }
0x15cb   :  { %2379 = vadd.xlane.f32.xlu0 %v2378_v1  ;;  %v2381_v26 = vsel %vm415_vm12, %v4079_v15, 0.0  ;;  %v2664_v1 = vld [vmem:[#allocation2 + $0x138] sm:$0xff] }
0x15cf   :  { %2382 = vadd.xlane.f32.xlu0 %v2381_v26  ;;  %v2665_v26 = vld [vmem:[#allocation2 + $0x140] sm:$0xff] }
0x15e5   :  { %2503 = vrot.lane.b32.xlu0 %v4538_v46, %s4148_s29  ;;  %v2532_v46 = vld [vmem:[#allocation2 + $0x118] sm:$0xff] }
0x15e6   :  { %v3840_v42 = vpack.c.bf16 %v2532_v46, %v2531_v4 }
0x15e8   :  { %3841 = vmatprep.subr.bf16.mxu0 %v3840_v42 }
0x15e9   :  { %2513 = vrot.lane.b32.xlu0 %v3603_v61, %s4165_s30 }
0x1658   :  { %v2380_v27 = vpop.xlane.xlu0 %2379 }
0x1659   :  { %4080 = vrcp.f32 %v2380_v27  ;;  %v2666_v27 = vld [vmem:[#allocation2 + $0x148] sm:$0xff] }
0x165c   :  { %v2383_v28 = vpop.xlane.xlu0 %2382 }
0x165d   :  { %4082 = vrcp.f32 %v2383_v28  ;;  %v3852_v28 = vpack.c.bf16 %v2666_v27, %v2665_v26 }
0x1660   :  { %v2504_v47 = vpop.permute.xlu0 %2503 }
0x1661   :  { %v2525_v56 = vsel %vm327_vm8, %v4534_v14, %v2504_v47  ;;  %v3259_v14 = vld [vmem:[%s4734_s3 + $0xb] ss:$0 sm:$0xff] }
0x1662   :  { %v2527_v62 = vsel %vm415_vm12, %v2525_v56, %v2512_v55 }
0x1663   :  { %v4081_v29 = vpop.eup %4080 }
0x1664   :  { %v4582_v37 = vmul.f32 %v4081_v29, %v4077_v7  ;;  %v2514_v51 = vpop.permute.xlu0 %2513 }
0x1665   :  { %v2528_v63 = vsel %vm415_vm12, %v2526_v60, %v2514_v51  ;;  %v2771_v60 = vld [vmem:[#allocation2 + $0x150] sm:$0xff] }
0x1666   :  { %3615 = vmatprep.mubr.msk.f32.mxu0 %vm415_vm12, %v4582_v37 }
0x1667   :  { %v4083_v38 = vpop.eup %4082 }
0x1668   :  { %v4586_v40 = vmul.f32 %v4083_v38, %v4079_v15 }
0x166a   :  { %3616 = vmatmul.mubr.msk.f32.vlgmr.msra.gmra.mrb[18].mxu0 %vm415_vm12, %v4586_v40 }
0x166b   :  { %3843 = vmatpush3.bf16.msra.mxu0 %v3840_v42 }
0x166c   :  { %3845 = vmatprep.subr.bf16.mxu0 %v3844_v43 }
0x166f   :  { %3847 = vmatpush3.bf16.msra.mxu0 %v3844_v43  ;;  %v3262_v43 = vld [vmem:[%s4734_s3 + $0xc] ss:$0 sm:$0xff] }
0x173d   :  { %v3617_v44 = vpop.f32.mrb[18].mxu0 }
0x173e   :  { %2521 = vrot.lane.b32.xlu0 %v3617_v44, %s4166_s6  ;;  %v2466_v45 = vpop.f32.mrb[19].mxu0 }
0x173f   :  { %2519 = vrot.lane.b32.xlu1 %v2466_v45, %s4166_s6 }
0x17b0   :  { %v2522_v59 = vpop.permute.xlu0 %2521 }
0x17b1   :  { %v2520_v61 = vpop.permute.xlu1 %2519  ;;  %v2530_v9 = vsel %vm1148_vm13, %v2528_v63, %v2522_v59  ;;  %v2773_v63 = vld [vmem:[#allocation2 + $0x160] sm:$0xff] }
0x17b2   :  { %v2529_v2 = vsel %vm1148_vm13, %v2527_v62, %v2520_v61  ;;  %v2772_v61 = vld [vmem:[#allocation2 + $0x158] sm:$0xff] }
0x17b3   :  { %3626 = vmatprep.mubr.msk.f32.mxu0 %vm166_vm7, %v2529_v2  ;;  %v3856_v62 = vpack.c.bf16 %v2772_v61, %v2771_v60  ;;  %v2774_v2 = vld [vmem:[#allocation2 + $0x168] sm:$0xff] }
0x17b4   :  { %3627 = vmatmul.mubr.msk.f32.vlgmr.msra.gmra.mrb[20].mxu0 %vm166_vm7, %v2530_v9  ;;  %v3860_v9 = vpack.c.bf16 %v2774_v2, %v2773_v63 }
0x17b5   :  { %3857 = vmatprep.subr.bf16.mxu0 %v3856_v62 }
0x17b6   :  { %3859 = vmatpush3.bf16.msra.mxu0 %v3856_v62 }
0x17b7   :  { %3861 = vmatprep.subr.bf16.mxu0 %v3860_v9 }
0x17ba   :  { %3863 = vmatpush3.bf16.msra.mxu0 %v3860_v9 }
0x1887   :  { %v3628_v5 = vpop.f32.mrb[20].mxu0 }
0x1888   :  { %v2618_v3 = vadd.f32 %v3628_v5, %v3259_v14  ;;  %v2612_v12 = vpop.f32.mrb[21].mxu0  ;;  %v2776_v5 = vld [vmem:[#allocation2 + $0x178] sm:$0xff] }
0x1889   :  { %v2613_v17 = vadd.f32 %v3259_v14, %v2612_v12  ;;  %v2775_v14 = vld [vmem:[#allocation2 + $0x170] sm:$0xff]  ;;  %v2777_v12 = vld [vmem:[#allocation2 + $0x180] sm:$0xff] }
0x188a   :  { %v2622_v49 = vadd.f32 %v2618_v3, %v4449_v34  ;;  %v3864_v3 = vpack.c.bf16 %v2776_v5, %v2775_v14 }
0x188b   :  { %v2621_v23 = vadd.f32 %v2613_v17, %v4447_v31  ;;  %v2663_v31 = vld [vmem:[#allocation2 + $0x130] sm:$0xff]  ;;  %v2778_v17 = vld [vmem:[#allocation2 + $0x188] sm:$0xff] }
0x188c   :  { %v2628_v18 = vsel %vm166_vm7, %v2622_v49, 0.0  ;;  %v3848_v15 = vpack.c.bf16 %v2664_v1, %v2663_v31  ;;  %3865 = vmatprep.subr.bf16.mxu0 %v3864_v3 }
0x188d   :  { %2629 = vadd.xlane.f32.xlu0 %v2628_v18  ;;  %v2625_v20 = vsel %vm166_vm7, %v2621_v23, 0.0  ;;  %3867 = vmatpush3.bf16.msra.mxu0 %v3864_v3  ;;  %v2913_v3 = vld [vmem:[#allocation2 + $0x198] sm:$0xff] }
0x188e   :  { %2626 = vadd.xlane.f32.xlu1 %v2625_v20  ;;  %3849 = vmatprep.subr.bf16.mxu1 %v3848_v15 }
0x188f   :  { %3851 = vmatpush3.bf16.msra.mxu1 %v3848_v15 }
0x1890   :  { %3853 = vmatprep.subr.bf16.mxu1 %v3852_v28 }
0x1893   :  { %3855 = vmatpush3.bf16.msra.mxu1 %v3852_v28 }
0x191a   :  { %v2630_v21 = vpop.xlane.xlu0 %2629 }
0x191b   :  { %v2632_v50 = vmul.f32 0.03125, %v2630_v21  ;;  %v2627_v22 = vpop.xlane.xlu1 %2626 }
0x191c   :  { %v2631_v52 = vmul.f32 0.03125, %v2627_v22 }
0x191d   :  { %v2634_v24 = vsub.f32 %v2622_v49, %v2632_v50  ;;  %v3868_v49 = vpack.c.bf16 %v2778_v17, %v2777_v12  ;;  %v4167_v12 = vmov 0.0|0.0  }
0x191e   :  { %v2633_v25 = vsub.f32 %v2621_v23, %v2631_v52  ;;  %v3264_v23 = vld [vmem:[%s4734_s3 + $0xe] ss:$0 sm:$0xff]  ;;  %3872 = vmatprep.subr.bf16.mxu1 %v4167_v12 }
0x191f   :  { %v2636_v10 = vmul.f32 %v2634_v24, %v2634_v24  ;;  %3869 = vmatprep.subr.bf16.mxu0 %v3868_v49 }
0x1920   :  { %v2635_v6 = vmul.f32 %v2633_v25, %v2633_v25  ;;  %3871 = vmatpush3.bf16.msra.mxu0 %v3868_v49 }
0x1921   :  { %v2640_v7 = vsel %vm166_vm7, %v2636_v10, 0.0  ;;  %3884 = vmatprep.subr.bf16.mxu0 %v4167_v12 }
0x1922   :  { %2641 = vadd.xlane.f32.xlu1 %v2640_v7  ;;  %v2637_v34 = vsel %vm166_vm7, %v2635_v6, 0.0 }
0x1923   :  { %2638 = vadd.xlane.f32.xlu0 %v2637_v34 }
0x19af   :  { %v2642_v29 = vpop.xlane.xlu1 %2641 }
0x19b0   :  { %v2644_v38 = vmul.f32 0.03125, %v2642_v29  ;;  %v2639_v4 = vpop.xlane.xlu0 %2638 }
0x19b1   :  { %v2643_v46 = vmul.f32 0.03125, %v2639_v4 }
0x19b2   :  { %v2646_v41 = vadd.f32 1e-12, %v2644_v38 }
0x19b3   :  { %v2645_v42 = vadd.f32 1e-12, %v2643_v46 }
0x19b4   :  { %4084 = vrsqrt.f32 %v2646_v41  ;;  %v3267_v41 = vld [vmem:[%s4734_s3 + $0xf] ss:$0 sm:$0xff] }
0x19b5   :  { %4086 = vrsqrt.f32 %v2645_v42 }
0x19be   :  { %v4085_v39 = vpop.eup %4084 }
0x19bf   :  { %v4087_v44 = vpop.eup %4086  ;;  %v2650_v45 = vmul.f32 %v4085_v39, %v2634_v24 }
0x19c0   :  { %v2649_v47 = vmul.f32 %v4087_v44, %v2633_v25 }
0x19c1   :  { %v2656_v51 = vmul.f32 %v3262_v43, %v2650_v45 }
0x19c2   :  { %v2655_v55 = vmul.f32 %v3262_v43, %v2649_v47 }
0x19c3   :  { %v2662_v59 = vadd.f32 %v3263_v16, %v2656_v51 }
0x19c4   :  { %v2661_v56 = vadd.f32 %v3263_v16, %v2655_v55 }
0x19c6   :  { %3637 = vmatprep.mubr.msk.f32.mxu1 %vm166_vm7, %v2661_v56 }
0x19c7   :  { %3638 = vmatmul.mubr.msk.f32.vlgmr.msra.gmra.mrb[24].mxu1 %vm166_vm7, %v2662_v59 }
0x19c8   :  { %3667 = vmatprep.mubr.msk.f32.mxu1 %vm4168_vm15, %v4151_v19 }
0x1a9a   :  { %v3639_v18 = vpop.f32.mrb[24].mxu1 }
0x1a9b   :  { %v2750_v20 = vadd.f32 %v3639_v18, %v3264_v23  ;;  %v2744_v21 = vpop.f32.mrb[25].mxu1 }
0x1a9c   :  { %v2745_v50 = vadd.f32 %v3264_v23, %v2744_v21 }
0x1a9d   :  { %v2754_v22 = vmul.f32 %v2750_v20, %v2750_v20 }
0x1a9e   :  { %v2753_v52 = vmul.f32 %v2745_v50, %v2745_v50 }
0x1a9f   :  { %v2756_v24 = vmul.f32 %v2754_v22, %v2750_v20 }
0x1aa0   :  { %v2755_v25 = vmul.f32 %v2753_v52, %v2745_v50 }
0x1aa1   :  { %v2758_v10 = vmul.f32 0.044715, %v2756_v24 }
0x1aa2   :  { %v2757_v6 = vmul.f32 0.044715, %v2755_v25  ;;  %v3270_v25 = vld [vmem:[%s4734_s3 + $0x10] ss:$0 sm:$0xff] }
0x1aa3   :  { %v2760_v7 = vadd.f32 %v2758_v10, %v2750_v20 }
0x1aa4   :  { %v2759_v34 = vadd.f32 %v2757_v6, %v2745_v50 }
0x1aa5   :  { %v2762_v31 = vmul.f32 0.7978846, %v2760_v7 }
0x1aa6   :  { %v2761_v1 = vmul.f32 0.7978846, %v2759_v34 }
0x1aa7   :  { %4088 = vtanh.f32 %v2762_v31  ;;  %v3271_v31 = vld [vmem:[%s4734_s3 + $0x11] ss:$0 sm:$0xff] }
0x1aa8   :  { %4090 = vtanh.f32 %v2761_v1 }
0x1ab1   :  { %v4089_v15 = vpop.eup %4088 }
0x1ab2   :  { %v4091_v26 = vpop.eup %4090  ;;  %v2766_v27 = vadd.f32 1.0, %v4089_v15 }
0x1ab3   :  { %v2765_v28 = vadd.f32 1.0, %v4091_v26 }
0x1ab4   :  { %v2768_v29 = vmul.f32 0.5, %v2766_v27 }
0x1ab5   :  { %v2767_v38 = vmul.f32 0.5, %v2765_v28 }
0x1ab6   :  { %v2770_v46 = vmul.f32 %v2768_v29, %v2750_v20 }
0x1ab7   :  { %v2769_v4 = vmul.f32 %v2767_v38, %v2745_v50 }
0x1ab9   :  { %3656 = vmatprep.mubr.msk.f32.mxu0 %vm1447_vm14, %v2769_v4 }
0x1aba   :  { %3657 = vmatmul.mubr.msk.f32.vlgmr.msra.gmra.mrb[22].mxu0 %vm1447_vm14, %v2770_v46 }
0x1abb   :  { %3697 = vmatprep.mubr.msk.f32.mxu0 %vm4168_vm15, %v4151_v19 }
0x1b8d   :  { %v3658_v42 = vpop.f32.mrb[22].mxu0 }
0x1b8e   :  { %v2862_v39 = vadd.f32 %v3658_v42, %v3267_v41  ;;  %v2856_v43 = vpop.f32.mrb[23].mxu0 }
0x1b8f   :  { %v2857_v44 = vadd.f32 %v3267_v41, %v2856_v43 }
0x1b90   :  { %v2866_v45 = vadd.f32 %v2862_v39, %v2662_v59 }
0x1b91   :  { %v2865_v47 = vadd.f32 %v2857_v44, %v2661_v56  ;;  %v2912_v56 = vld [vmem:[#allocation2 + $0x190] sm:$0xff] }
0x1b92   :  { %v2872_v16 = vsel %vm166_vm7, %v2866_v45, 0.0 }
0x1b93   :  { %2873 = vadd.xlane.f32.xlu0 %v2872_v16  ;;  %v2869_v51 = vsel %vm166_vm7, %v2865_v47, 0.0  ;;  %v2996_v16 = vld [vmem:[#allocation2 + $0x1b8] sm:$0xff] }
0x1b94   :  { %2870 = vadd.xlane.f32.xlu1 %v2869_v51  ;;  %v2997_v51 = vld [vmem:[#allocation2 + $0x1c0] sm:$0xff] }
0x1c20   :  { %v2874_v55 = vpop.xlane.xlu0 %2873 }
0x1c21   :  { %v2876_v60 = vmul.f32 0.03125, %v2874_v55  ;;  %v2871_v61 = vpop.xlane.xlu1 %2870  ;;  %v2998_v55 = vld [vmem:[#allocation2 + $0x1c8] sm:$0xff] }
0x1c22   :  { %v2875_v62 = vmul.f32 0.03125, %v2871_v61  ;;  %v3078_v61 = vld [vmem:[#allocation2 + $0x1d0] sm:$0xff] }
0x1c23   :  { %v2878_v63 = vsub.f32 %v2866_v45, %v2876_v60  ;;  %v3882_v60 = vpack.c.bf16 %v2998_v55, %v2997_v51 }
0x1c24   :  { %v2877_v2 = vsub.f32 %v2865_v47, %v2875_v62  ;;  %v2995_v47 = vld [vmem:[#allocation2 + $0x1b0] sm:$0xff]  ;;  %v3079_v62 = vld [vmem:[#allocation2 + $0x1d8] sm:$0xff] }
0x1c25   :  { %v2880_v9 = vmul.f32 %v2878_v63, %v2878_v63 }
0x1c26   :  { %v2879_v14 = vmul.f32 %v2877_v2, %v2877_v2 }
0x1c27   :  { %v2884_v5 = vsel %vm166_vm7, %v2880_v9, 0.0 }
0x1c28   :  { %2885 = vadd.xlane.f32.xlu0 %v2884_v5  ;;  %v2881_v59 = vsel %vm166_vm7, %v2879_v14, 0.0  ;;  %v3082_v14 = vld [vmem:[#allocation2 + $0x1f0] sm:$0xff]  ;;  %v3083_v5 = vld [vmem:[#allocation2 + $0x1f8] sm:$0xff] }
0x1c29   :  { %2882 = vadd.xlane.f32.xlu1 %v2881_v59  ;;  %v3891_v59 = vpack.c.bf16 %v3083_v5, %v3082_v14 }
0x1c3a   :  { %1140 = vrot.lane.b32.xlu1 %v4336_v35, %s4165_s30  ;;  %v3873_v35 = vpack.c.bf16 %v2913_v3, %v2912_v56  ;;  %v3272_v56 = vld [vmem:[%s4734_s3 + $0x12] ss:$0 sm:$0xff] }
0x1c3c   :  { %3874 = vmatpush3.bf16.msra.mxu1 %v3873_v35 }
0x1c3d   :  { %3875 = vmatprep.subr.bf16.mxu1 %v4167_v12 }
0x1c3e   :  { %1137 = vrot.lane.b32.xlu0 %v4373_v33, %s4148_s29  ;;  %1143 = vrot.lane.b32.xlu1 %v4388_v53, %s4166_s6  ;;  %v2915_v33 = vld [vmem:[#allocation2 + $0x1a8] sm:$0xff] }
0x1c42   :  { %1151 = vrot.lane.b32.xlu0 %v4369_v32, %s4154_s17  ;;  %1154 = vrot.lane.b32.xlu1 %v4338_v36, %s4148_s29  ;;  %v2914_v32 = vld [vmem:[#allocation2 + $0x1a0] sm:$0xff] }
0x1c43   :  { %v3876_v36 = vpack.c.bf16 %v2915_v33, %v2914_v32 }
0x1c45   :  { %3877 = vmatpush3.bf16.msra.mxu1 %v3876_v36  ;;  %v3084_v36 = vld [vmem:[#allocation2 + $0x200] sm:$0xff] }
0x1c46   :  { %1157 = vrot.lane.b32.xlu0 %v4390_v54, %s4165_s30  ;;  %2475 = vrot.lane.b32.xlu1 %v4516_v8, %s4148_s29 }
0x1c47   :  { %3878 = vmatprep.subr.bf16.mxu1 %v4167_v12 }
0x1c4a   :  { %2478 = vrot.lane.b32.xlu0 %v4556_v57, %s4165_s30  ;;  %2481 = vrot.lane.b32.xlu1 %v4582_v37, %s4166_s6 }
0x1c4e   :  { %2488 = vrot.lane.b32.xlu0 %v4514_v0, %s4154_s17  ;;  %2491 = vrot.lane.b32.xlu1 %v4558_v58, %s4148_s29 }
0x1c52   :  { %2494 = vrot.lane.b32.xlu0 %v4586_v40, %s4165_s30 }
0x1cb5   :  { %v2886_v53 = vpop.xlane.xlu0 %2885 }
0x1cb6   :  { %v2888_v54 = vmul.f32 0.03125, %v2886_v53  ;;  %v2883_v8 = vpop.xlane.xlu1 %2882  ;;  %v3085_v53 = vld [vmem:[#allocation2 + $0x208] sm:$0xff] }
0x1cb7   :  { %v2887_v57 = vmul.f32 0.03125, %v2883_v8  ;;  %v3274_v8 = vld [vmem:[%s4734_s3 + $0x13] ss:$0 sm:$0xff] }
0x1cb8   :  { %v2890_v37 = vadd.f32 1e-12, %v2888_v54  ;;  %v3894_v54 = vpack.c.bf16 %v3085_v53, %v3084_v36 }
0x1cb9   :  { %v2889_v17 = vadd.f32 1e-12, %v2887_v57  ;;  %v1138_v49 = vpop.permute.xlu0 %1137 }
0x1cba   :  { %4092 = vrsqrt.f32 %v2890_v37  ;;  %v1141_v23 = vpop.permute.xlu1 %1140  ;;  %v1146_v0 = vsel %vm327_vm8, %v4367_v30, %v1138_v49  ;;  %v3276_v49 = vld [vmem:[%s4734_s3 + $0x14] ss:$0 sm:$0xff] }
0x1cbb   :  { %4094 = vrsqrt.f32 %v2889_v17  ;;  %v1147_v18 = vsel %vm415_vm12, %v1146_v0, %v1141_v23 }
0x1cbd   :  { %v1152_v58 = vpop.permute.xlu0 %1151 }
0x1cbe   :  { %v1144_v20 = vpop.permute.xlu1 %1143  ;;  %v1160_v50 = vsel %vm327_vm8, %v1152_v58, %v4384_v13 }
0x1cbf   :  { %v1149_v21 = vsel %vm1148_vm13, %v1147_v18, %v1144_v20 }
0x1cc0   :  { %1150 = vst.msk [vmem:[%s4736_s5] sm:$0xff] %vm166_vm7, %v1149_v21 }
0x1cc1   :  { %v1158_v40 = vpop.permute.xlu0 %1157 }
0x1cc2   :  { %v1155_v22 = vpop.permute.xlu1 %1154 }
0x1cc3   :  { %v1161_v52 = vsel %vm415_vm12, %v1160_v50, %v1155_v22 }
0x1cc4   :  { %v4093_v24 = vpop.eup %4092  ;;  %v1162_v30 = vsel %vm1148_vm13, %v1161_v52, %v1158_v40 }
0x1cc5   :  { %v4095_v10 = vpop.eup %4094  ;;  %v2894_v6 = vmul.f32 %v4093_v24, %v2878_v63  ;;  %1163 = vst.msk [vmem:[%s4736_s5 + $0x8] sm:$0xff] %vm166_vm7, %v1162_v30  ;;  %v2479_v7 = vpop.permute.xlu0 %2478  ;;  %v3885_v63 = vpack.c.bf16 %v3079_v62, %v3078_v61 }
0x1cc6   :  { %v2893_v34 = vmul.f32 %v4095_v10, %v2877_v2  ;;  %v2476_v13 = vpop.permute.xlu1 %2475  ;;  %v3081_v2 = vld [vmem:[#allocation2 + $0x1e8] sm:$0xff] }
0x1cc7   :  { %v2484_v1 = vsel %vm327_vm8, %v4510_v48, %v2476_v13  ;;  %v2900_v15 = vmul.f32 %v3270_v25, %v2894_v6  ;;  %3886 = vmatpush3.bf16.msra.mxu0 %v3885_v63 }
0x1cc8   :  { %v2899_v26 = vmul.f32 %v3270_v25, %v2893_v34  ;;  %v2485_v29 = vsel %vm415_vm12, %v2484_v1, %v2479_v7  ;;  %3887 = vmatprep.subr.bf16.mxu0 %v4167_v12 }
0x1cc9   :  { %v2489_v27 = vpop.permute.xlu0 %2488  ;;  %v2906_v28 = vadd.f32 %v3271_v31, %v2900_v15 }
0x1cca   :  { %v2482_v38 = vpop.permute.xlu1 %2481  ;;  %v2905_v4 = vadd.f32 %v3271_v31, %v2899_v26  ;;  %v2497_v48 = vsel %vm327_vm8, %v2489_v27, %v4522_v11  ;;  %v3879_v11 = vpack.c.bf16 %v2996_v16, %v2995_v47 }
0x1ccb   :  { %v2486_v46 = vsel %vm1148_vm13, %v2485_v29, %v2482_v38  ;;  %v2908_v41 = vrot.slane %v2906_v28, 7 }
0x1ccc   :  { %2487 = vst.msk [vmem:[%s4736_s5 + $0x10] sm:$0xff] %vm166_vm7, %v2486_v46 }
0x1ccd   :  { %v2911_v42 = vsel %vm2910_vm0, %v2905_v4, %v2908_v41  ;;  %v2495_v43 = vpop.permute.xlu0 %2494 }
0x1cce   :  { %3668 = vmatmul.mubr.msk.f32.vlgmr.msra.gmra.mrb[26].mxu1 %vm166_vm7, %v2911_v42  ;;  %v2492_v39 = vpop.permute.xlu1 %2491 }
0x1ccf   :  { %v2498_v44 = vsel %vm415_vm12, %v2497_v48, %v2492_v39  ;;  %3678 = vmatprep.mubr.msk.f32.mxu1 %vm4168_vm15, %v4151_v19  ;;  %3880 = vmatpush3.bf16.msra.mxu1 %v3879_v11  ;;  %v3080_v19 = vld [vmem:[#allocation2 + $0x1e0] sm:$0xff] }
0x1cd0   :  { %v2499_v45 = vsel %vm1148_vm13, %v2498_v44, %v2495_v43  ;;  %3881 = vmatprep.subr.bf16.mxu1 %v4167_v12  ;;  %v3888_v9 = vpack.c.bf16 %v3081_v2, %v3080_v19 }
0x1cd1   :  { %2500 = vst.msk [vmem:[%s4736_s5 + $0x18] sm:$0xff] %vm166_vm7, %v2499_v45 }
0x1cd2   :  { %3889 = vmatpush3.bf16.msra.mxu0 %v3888_v9 }
0x1cd3   :  { %3883 = vmatpush3.bf16.msra.mxu1 %v3882_v60  ;;  %3890 = vmatprep.subr.bf16.mxu0 %v4167_v12 }
0x1cd6   :  { %3892 = vmatpush3.bf16.msra.mxu0 %v3891_v59 }
0x1cd7   :  { %3893 = vmatprep.subr.bf16.mxu0 %v4167_v12 }
0x1cda   :  { %3895 = vmatpush3.bf16.msra.mxu0 %v3894_v54 }
0x1da1   :  { %v2990_v3 = vpop.f32.mrb[26].mxu1 }
0x1da2   :  { %v2991_v35 = vadd.f32 %v3272_v56, %v2990_v3  ;;  %v3669_v32 = vpop.f32.mrb[27].mxu1 }
0x1da4   :  { %4096 = vtanh.f32 %v2991_v35 }
0x1dae   :  { %v4097_v33 = vpop.eup %4096 }
0x1daf   :  { %3679 = vmatmul.mubr.msk.f32.vlgmr.msra.gmra.mrb[28].mxu1 %vm166_vm7, %v4097_v33 }
0x1e82   :  { %v3073_v12 = vpop.f32.mrb[28].mxu1 }
0x1e83   :  { %v3074_v57 = vadd.f32 %v3274_v8, %v3073_v12  ;;  %v3680_v37 = vpop.f32.mrb[29].mxu1 }
0x1e85   :  { %v3077_v17 = vmax.f32 %v3074_v57, 0.0 }
0x1e87   :  { %3698 = vmatmul.mubr.msk.f32.vlgmr.msra.gmra.mrb[24].mxu0 %vm1447_vm14, %v3077_v17 }
0x1f5a   :  { %v3160_v23 = vpop.f32.mrb[24].mxu0 }
0x1f5b   :  { %v3161_v0 = vadd.f32 %v3276_v49, %v3160_v23  ;;  %v3699_v58 = vpop.f32.mrb[25].mxu0 }
0x1f5d   :  { %3165 = vst.msk [vmem:[#allocation5] sm:$0x3] %vm3164_vm1, %v3161_v0 }
0x1f5e   :  { %4131 = shalt.err (!%p4128_p12)
}
0x1f5f   :  { %s4132_s1 = scalar_lea.hbm %s4735_s4, 32 }
0x1f60   :  { %p4133_p13 = scmp.ne.s32.totalorder %s4735_s4, %s4132_s1  ;;  %p4136_p0 = scmp.lt.u32.totalorder %s4132_s1, %s4735_s4 }
0x1f62   :  { %p4138_p1 = pnand %p4136_p0, %p4133_p13 }
0x1f64   :  { %4141 = shalt.err (!%p4138_p1)
}
0x1f65   :  { %3175 = dma.vmem_to_hbm [thread:$0]  %s3173_s15, 32, %s4735_s4, [#allocation4]  }
0x1f66   :  { %4144 = dma.done.wait [#allocation4], 32  }
0x1f67   :  { %4145 = vsyncadd [#allocation4], 4294967264 }
0x1f68   :  { %3183 = vsyncpa [#allocation3], 1 }
0x1f69   :  { %3184 = vsyncpa [#allocation4], 1 }

</bundles_post_ra>
